<compile_context>
chip_gen: v5e
topology: v5e:2x2
jax: 0.10.0
libtpu: 0.0.40
codegen_flags: <defaults>
</compile_context>

<pallas_src>
import math

import jax
import jax.numpy as jnp
from jax.experimental import pallas as pl
from jax.experimental.pallas import tpu as pltpu


def _layer_norm(x, gamma, beta, eps=1e-5):
    """LayerNorm over the last axis (matches nn.LayerNorm(d_model), eps=1e-5)."""
    mean = jnp.mean(x, axis=-1, keepdims=True)
    cen = x - mean
    var = jnp.mean(cen * cen, axis=-1, keepdims=True)
    return cen * jax.lax.rsqrt(var + eps) * gamma + beta


def _make_kernel(num_layers, nhead, d_model):
    d_head = d_model // nhead
    scale = 1.0 / math.sqrt(d_head)
    D = d_model

    def kernel(x_ref, pe_ref, bias_ref,
               wqkv_ref, bqkv_ref, wo_ref, bo_ref,
               g1_ref, be1_ref, w1_ref, bf1_ref,
               w2_ref, bf2_ref, g2_ref, be2_ref,
               o_ref):
        # Merged rows: [N, D] with N = B*S. pos encoding add; dropout = identity (eval).
        h = x_ref[...] + pe_ref[...]                                   # [N, D]
        bias = bias_ref[...]                                           # [N, N] block-diag mask

        for l in range(num_layers):
            # ---- multi-head self attention (post-norm layer) ----
            # Fused QKV projection: one matmul, 3*D-wide output.
            qkv = jnp.dot(h, wqkv_ref[l],
                          preferred_element_type=jnp.float32) + bqkv_ref[l]   # [N, 3D]

            ctx_heads = []
            for hh in range(nhead):
                qh = qkv[:, hh * d_head:(hh + 1) * d_head] * scale            # [N, dh]
                kh = qkv[:, D + hh * d_head: D + (hh + 1) * d_head]           # [N, dh]
                vh = qkv[:, 2 * D + hh * d_head: 2 * D + (hh + 1) * d_head]   # [N, dh]
                # Scores over ALL merged rows; additive -1e30 bias zeroes the
                # cross-batch blocks after softmax (block-diagonal attention).
                s = jnp.dot(qh, kh.T, preferred_element_type=jnp.float32) + bias  # [N, N]
                s = s - jnp.max(s, axis=-1, keepdims=True)
                p = jnp.exp(s)
                p = p * pl.reciprocal(jnp.sum(p, axis=-1, keepdims=True), approx=True)
                ctx_heads.append(jnp.dot(p, vh,
                                         preferred_element_type=jnp.float32))     # [N, dh]

            # Concatenate heads, then ONE output-projection matmul.
            ctx = jnp.concatenate(ctx_heads, axis=-1)                             # [N, D]
            attn = jnp.dot(ctx, wo_ref[l],
                           preferred_element_type=jnp.float32) + bo_ref[l]        # [N, D]
            # dropout1 = identity (eval); residual + norm1
            h = _layer_norm(h + attn, g1_ref[l], be1_ref[l])

            # ---- feed-forward block: linear1 -> ReLU -> (dropout) -> linear2 ----
            f = jnp.dot(h, w1_ref[l], preferred_element_type=jnp.float32) + bf1_ref[l]
            f = jnp.maximum(f, 0.0)
            f = jnp.dot(f, w2_ref[l], preferred_element_type=jnp.float32) + bf2_ref[l]
            # dropout2 = identity (eval); residual + norm2
            h = _layer_norm(h + f, g2_ref[l], be2_ref[l])

        o_ref[...] = h

    return kernel


def transformer_encoder_forward(src, pe, params, *, nhead):
    """src: [B, S, D] f32, pe: [B, 1, D] f32 (== pe[:B] of the torch buffer)."""
    B, S, D = src.shape
    (wq, wk, wv, wo, bq, bk, bv, bo,
     g1, be1, w1, bf1, w2, bf2, g2, be2) = params
    L = wq.shape[0]
    N = B * S

    # Fuse Q/K/V projection weights + biases in the wrapper (one matmul per layer).
    wqkv = jnp.concatenate([wq, wk, wv], axis=-1)      # [L, D, 3D]
    bqkv = jnp.concatenate([bq, bk, bv], axis=-1)      # [L, 1, 3D]

    # Merge B*S rows for all dense matmuls. Positional encoding pe[:B] is broadcast
    # over the sequence axis (faithful to the torch module) and materialized per row.
    x_flat = src.reshape(N, D)
    pe_rows = jnp.broadcast_to(pe.reshape(B, 1, D), (B, S, D)).reshape(N, D)

    # Additive block-diagonal mask: attention over merged rows never mixes batch
    # elements (cross-batch logits -> -1e30 -> softmax weight exactly 0).
    row_batch = jnp.arange(N, dtype=jnp.int32) // S
    attn_bias = jnp.where(row_batch[:, None] == row_batch[None, :],
                          0.0, -1e30).astype(jnp.float32)

    kernel = _make_kernel(L, nhead, D)

    weight_list = [wqkv, bqkv, wo, bo, g1, be1, w1, bf1, w2, bf2, g2, be2]

    def whole(arr):
        # Full-array block, constant block index -> loaded once into VMEM.
        nd = arr.ndim
        return pl.BlockSpec(arr.shape, lambda i, nd=nd: (0,) * nd)

    in_specs = ([whole(x_flat), whole(pe_rows), whole(attn_bias)]
                + [whole(w) for w in weight_list])

    out = pl.pallas_call(
        kernel,
        out_shape=jax.ShapeDtypeStruct((N, D), jnp.float32),
        grid=(1,),                                       # single step: whole workload
        in_specs=in_specs,
        out_specs=pl.BlockSpec((N, D), lambda i: (0, 0)),
        compiler_params=pltpu.CompilerParams(
            dimension_semantics=("arbitrary",),          # nothing to megacore-split at B=2
            vmem_limit_bytes=32 << 20,                   # working set < 1 MiB
        ),
    )(x_flat, pe_rows, attn_bias, *weight_list)
    return out.reshape(B, S, D)


def positional_encoding(num_pos, d_model):
    """First `num_pos` rows of the PositionalEncoding buffer, shape [num_pos, 1, d_model]."""
    position = jnp.arange(num_pos, dtype=jnp.float32)[:, None]
    div_term = jnp.exp(jnp.arange(0, d_model, 2, dtype=jnp.float32)
                       * (-math.log(10000.0) / d_model))
    pe = jnp.zeros((num_pos, d_model), jnp.float32)
    pe = pe.at[:, 0::2].set(jnp.sin(position * div_term))
    pe = pe.at[:, 1::2].set(jnp.cos(position * div_term))
    return pe.reshape(num_pos, 1, d_model)


def init_params(key, num_layers, d_model, dim_ff):
    """Deterministic synthetic init. Layer-stacked weights, x@W layout."""
    L, D, F = num_layers, d_model, dim_ff
    ks = jax.random.split(key, 12)

    def uni(k, shape, fan_in):
        bound = 1.0 / math.sqrt(fan_in)
        return jax.random.uniform(k, shape, jnp.float32, -bound, bound)

    wq = uni(ks[0], (L, D, D), D)
    wk = uni(ks[1], (L, D, D), D)
    wv = uni(ks[2], (L, D, D), D)
    wo = uni(ks[3], (L, D, D), D)
    bq = uni(ks[4], (L, 1, D), D)
    bk = uni(ks[5], (L, 1, D), D)
    bv = uni(ks[6], (L, 1, D), D)
    bo = uni(ks[7], (L, 1, D), D)
    w1 = uni(ks[8], (L, D, F), D)
    bf1 = uni(ks[9], (L, 1, F), D)
    w2 = uni(ks[10], (L, F, D), F)
    bf2 = uni(ks[11], (L, 1, D), F)
    g1 = jnp.ones((L, 1, D), jnp.float32)
    be1 = jnp.zeros((L, 1, D), jnp.float32)
    g2 = jnp.ones((L, 1, D), jnp.float32)
    be2 = jnp.zeros((L, 1, D), jnp.float32)
    return (wq, wk, wv, wo, bq, bk, bv, bo, g1, be1, w1, bf1, w2, bf2, g2, be2)


def reference_forward(src, pe, params, *, nhead):
    """Pure-JAX reference (same math / param layout) for correctness check."""
    (wq, wk, wv, wo, bq, bk, bv, bo,
     g1, be1, w1, bf1, w2, bf2, g2, be2) = params
    B, S, D = src.shape
    L = wq.shape[0]
    dh = D // nhead
    scale = 1.0 / math.sqrt(dh)

    h = src + pe                                                     # [B,S,D] + [B,1,D]
    for l in range(L):
        q = h @ wq[l] + bq[l]
        k = h @ wk[l] + bk[l]
        v = h @ wv[l] + bv[l]
        qh = q.reshape(B, S, nhead, dh) * scale
        kh = k.reshape(B, S, nhead, dh)
        vh = v.reshape(B, S, nhead, dh)
        s = jnp.einsum('bqhd,bkhd->bhqk', qh, kh)
        p = jax.nn.softmax(s, axis=-1)
        o = jnp.einsum('bhqk,bkhd->bqhd', p, vh).reshape(B, S, D)
        attn = o @ wo[l] + bo[l]
        h = _layer_norm(h + attn, g1[l], be1[l])
        f = jnp.maximum(h @ w1[l] + bf1[l], 0.0)
        f = f @ w2[l] + bf2[l]
        h = _layer_norm(h + f, g2[l], be2[l])
    return h


if __name__ == "__main__":
    key = jax.random.PRNGKey(0)
    k_x, k_p = jax.random.split(key)

    # Small shapes implied by the module: batch=2, seq=8, d_model=32,
    # nhead=4, num_encoder_layers=2, dim_feedforward=64.
    B, S, D = 2, 8, 32
    NHEAD, NUM_LAYERS, DIM_FF = 4, 2, 64
    assert D % NHEAD == 0

    src = jax.random.normal(k_x, (B, S, D), jnp.float32)
    params = init_params(k_p, NUM_LAYERS, D, DIM_FF)
    pe = positional_encoding(B, D)   # pe[:src.size(0)], as in the original forward

    out = transformer_encoder_forward(src, pe, params, nhead=NHEAD)
    out = jax.block_until_ready(out)

    ref = jax.block_until_ready(reference_forward(src, pe, params, nhead=NHEAD))
    assert out.shape == (B, S, D)
    assert jnp.allclose(out, ref, atol=2e-3, rtol=2e-3), "mismatch vs reference"

    print("KERNEL_OK")
</pallas_src>

<mosaic_0001>
module attributes {stable_mosaic.version = 11 : i64} {
  func.func @kernel(%arg0: i32, %arg1: memref<16x32xf32, #tpu.memory_space<vmem>>, %arg2: memref<16x32xf32, #tpu.memory_space<vmem>>, %arg3: memref<16x16xf32, #tpu.memory_space<vmem>>, %arg4: memref<2x32x96xf32, #tpu.memory_space<vmem>>, %arg5: memref<2x1x96xf32, #tpu.memory_space<vmem>>, %arg6: memref<2x32x32xf32, #tpu.memory_space<vmem>>, %arg7: memref<2x1x32xf32, #tpu.memory_space<vmem>>, %arg8: memref<2x1x32xf32, #tpu.memory_space<vmem>>, %arg9: memref<2x1x32xf32, #tpu.memory_space<vmem>>, %arg10: memref<2x32x64xf32, #tpu.memory_space<vmem>>, %arg11: memref<2x1x64xf32, #tpu.memory_space<vmem>>, %arg12: memref<2x64x32xf32, #tpu.memory_space<vmem>>, %arg13: memref<2x1x32xf32, #tpu.memory_space<vmem>>, %arg14: memref<2x1x32xf32, #tpu.memory_space<vmem>>, %arg15: memref<2x1x32xf32, #tpu.memory_space<vmem>>, %arg16: memref<16x32xf32, #tpu.memory_space<vmem>>) attributes {dimension_semantics = [#tpu.dimension_semantics<arbitrary>], iteration_bounds = array<i64: 1>, scalar_prefetch = 0 : i64, scratch_operands = 0 : i64, tpu.core_type = #tpu.core_type<tc>, window_params = [{pipeline_mode = #tpu.pipeline_mode<synchronous>, transform_indices = @transform_0, window_bounds = array<i64: 16, 32>}, {pipeline_mode = #tpu.pipeline_mode<synchronous>, transform_indices = @transform_1, window_bounds = array<i64: 16, 32>}, {pipeline_mode = #tpu.pipeline_mode<synchronous>, transform_indices = @transform_2, window_bounds = array<i64: 16, 16>}, {pipeline_mode = #tpu.pipeline_mode<synchronous>, transform_indices = @transform_3, window_bounds = array<i64: 2, 32, 96>}, {pipeline_mode = #tpu.pipeline_mode<synchronous>, transform_indices = @transform_4, window_bounds = array<i64: 2, 1, 96>}, {pipeline_mode = #tpu.pipeline_mode<synchronous>, transform_indices = @transform_5, window_bounds = array<i64: 2, 32, 32>}, {pipeline_mode = #tpu.pipeline_mode<synchronous>, transform_indices = @transform_6, window_bounds = array<i64: 2, 1, 32>}, {pipeline_mode = #tpu.pipeline_mode<synchronous>, transform_indices = @transform_7, window_bounds = array<i64: 2, 1, 32>}, {pipeline_mode = #tpu.pipeline_mode<synchronous>, transform_indices = @transform_8, window_bounds = array<i64: 2, 1, 32>}, {pipeline_mode = #tpu.pipeline_mode<synchronous>, transform_indices = @transform_9, window_bounds = array<i64: 2, 32, 64>}, {pipeline_mode = #tpu.pipeline_mode<synchronous>, transform_indices = @transform_10, window_bounds = array<i64: 2, 1, 64>}, {pipeline_mode = #tpu.pipeline_mode<synchronous>, transform_indices = @transform_11, window_bounds = array<i64: 2, 64, 32>}, {pipeline_mode = #tpu.pipeline_mode<synchronous>, transform_indices = @transform_12, window_bounds = array<i64: 2, 1, 32>}, {pipeline_mode = #tpu.pipeline_mode<synchronous>, transform_indices = @transform_13, window_bounds = array<i64: 2, 1, 32>}, {pipeline_mode = #tpu.pipeline_mode<synchronous>, transform_indices = @transform_14, window_bounds = array<i64: 2, 1, 32>}, {pipeline_mode = #tpu.pipeline_mode<synchronous>, transform_indices = @transform_15, window_bounds = array<i64: 16, 32>}]} {
    %c0 = arith.constant 0 : index
    %c0_0 = arith.constant 0 : index
    %0 = vector.load %arg1[%c0, %c0_0] : memref<16x32xf32, #tpu.memory_space<vmem>>, vector<16x32xf32>
    %c0_1 = arith.constant 0 : index
    %c0_2 = arith.constant 0 : index
    %1 = vector.load %arg2[%c0_1, %c0_2] : memref<16x32xf32, #tpu.memory_space<vmem>>, vector<16x32xf32>
    %2 = arith.addf %0, %1 : vector<16x32xf32>
    %c0_3 = arith.constant 0 : index
    %c0_4 = arith.constant 0 : index
    %3 = vector.load %arg3[%c0_3, %c0_4] : memref<16x16xf32, #tpu.memory_space<vmem>>, vector<16x16xf32>
    %c0_5 = arith.constant 0 : index
    %c0_6 = arith.constant 0 : index
    %c0_7 = arith.constant 0 : index
    %4 = vector.load %arg4[%c0_5, %c0_6, %c0_7] : memref<2x32x96xf32, #tpu.memory_space<vmem>>, vector<1x32x96xf32>
    %5 = vector.shape_cast %4 : vector<1x32x96xf32> to vector<32x96xf32>
    %cst = arith.constant dense<0.000000e+00> : vector<16x96xf32>
    %6 = tpu.matmul %2, %5, %cst {dimension_numbers = #tpu.dot_dimension_numbers<[1], [0], [0], [1], [0, 0, 1, 1], [], []>} : vector<16x32xf32>, vector<32x96xf32>, vector<16x96xf32> -> vector<16x96xf32>
    %c0_8 = arith.constant 0 : index
    %c0_9 = arith.constant 0 : index
    %c0_10 = arith.constant 0 : index
    %7 = vector.load %arg5[%c0_8, %c0_9, %c0_10] : memref<2x1x96xf32, #tpu.memory_space<vmem>>, vector<1x1x96xf32>
    %8 = vector.shape_cast %7 : vector<1x1x96xf32> to vector<1x96xf32>
    %9 = vector.broadcast %8 : vector<1x96xf32> to vector<16x96xf32>
    %10 = arith.addf %6, %9 : vector<16x96xf32>
    %11 = vector.extract_strided_slice %10 {offsets = [0, 0], sizes = [16, 8], strides = [1, 1]} : vector<16x96xf32> to vector<16x8xf32>
    %cst_11 = arith.constant 0.353553385 : f32
    %12 = vector.broadcast %cst_11 : f32 to vector<16x8xf32>
    %13 = arith.mulf %11, %12 : vector<16x8xf32>
    %14 = vector.extract_strided_slice %10 {offsets = [0, 32], sizes = [16, 8], strides = [1, 1]} : vector<16x96xf32> to vector<16x8xf32>
    %15 = vector.extract_strided_slice %10 {offsets = [0, 64], sizes = [16, 8], strides = [1, 1]} : vector<16x96xf32> to vector<16x8xf32>
    %16 = tpu.transpose %14, [1, 0] : vector<16x8xf32> -> vector<8x16xf32>
    %cst_12 = arith.constant dense<0.000000e+00> : vector<16x16xf32>
    %17 = tpu.matmul %13, %16, %cst_12 {dimension_numbers = #tpu.dot_dimension_numbers<[1], [0], [0], [1], [0, 0, 1, 1], [], []>} : vector<16x8xf32>, vector<8x16xf32>, vector<16x16xf32> -> vector<16x16xf32>
    %18 = arith.addf %17, %3 : vector<16x16xf32>
    %cst_13 = arith.constant dense<0xFF800000> : vector<16xf32>
    %19 = vector.multi_reduction <maximumf>, %18, %cst_13 [1] : vector<16x16xf32> to vector<16xf32>
    %20 = vector.shape_cast %19 : vector<16xf32> to vector<16x1xf32>
    %21 = vector.broadcast %20 : vector<16x1xf32> to vector<16x16xf32>
    %22 = arith.subf %18, %21 : vector<16x16xf32>
    %23 = math.exp %22 : vector<16x16xf32>
    %cst_14 = arith.constant dense<0.000000e+00> : vector<16xf32>
    %24 = vector.multi_reduction <add>, %23, %cst_14 [1] : vector<16x16xf32> to vector<16xf32>
    %25 = vector.shape_cast %24 : vector<16xf32> to vector<16x1xf32>
    %26 = tpu.reciprocal %25 {approx = true} : vector<16x1xf32> -> vector<16x1xf32>
    %27 = vector.broadcast %26 : vector<16x1xf32> to vector<16x16xf32>
    %28 = arith.mulf %23, %27 : vector<16x16xf32>
    %cst_15 = arith.constant dense<0.000000e+00> : vector<16x8xf32>
    %29 = tpu.matmul %28, %15, %cst_15 {dimension_numbers = #tpu.dot_dimension_numbers<[1], [0], [0], [1], [0, 0, 1, 1], [], []>} : vector<16x16xf32>, vector<16x8xf32>, vector<16x8xf32> -> vector<16x8xf32>
    %30 = vector.extract_strided_slice %10 {offsets = [0, 8], sizes = [16, 8], strides = [1, 1]} : vector<16x96xf32> to vector<16x8xf32>
    %cst_16 = arith.constant 0.353553385 : f32
    %31 = vector.broadcast %cst_16 : f32 to vector<16x8xf32>
    %32 = arith.mulf %30, %31 : vector<16x8xf32>
    %33 = vector.extract_strided_slice %10 {offsets = [0, 40], sizes = [16, 8], strides = [1, 1]} : vector<16x96xf32> to vector<16x8xf32>
    %34 = vector.extract_strided_slice %10 {offsets = [0, 72], sizes = [16, 8], strides = [1, 1]} : vector<16x96xf32> to vector<16x8xf32>
    %35 = tpu.transpose %33, [1, 0] : vector<16x8xf32> -> vector<8x16xf32>
    %cst_17 = arith.constant dense<0.000000e+00> : vector<16x16xf32>
    %36 = tpu.matmul %32, %35, %cst_17 {dimension_numbers = #tpu.dot_dimension_numbers<[1], [0], [0], [1], [0, 0, 1, 1], [], []>} : vector<16x8xf32>, vector<8x16xf32>, vector<16x16xf32> -> vector<16x16xf32>
    %37 = arith.addf %36, %3 : vector<16x16xf32>
    %cst_18 = arith.constant dense<0xFF800000> : vector<16xf32>
    %38 = vector.multi_reduction <maximumf>, %37, %cst_18 [1] : vector<16x16xf32> to vector<16xf32>
    %39 = vector.shape_cast %38 : vector<16xf32> to vector<16x1xf32>
    %40 = vector.broadcast %39 : vector<16x1xf32> to vector<16x16xf32>
    %41 = arith.subf %37, %40 : vector<16x16xf32>
    %42 = math.exp %41 : vector<16x16xf32>
    %cst_19 = arith.constant dense<0.000000e+00> : vector<16xf32>
    %43 = vector.multi_reduction <add>, %42, %cst_19 [1] : vector<16x16xf32> to vector<16xf32>
    %44 = vector.shape_cast %43 : vector<16xf32> to vector<16x1xf32>
    %45 = tpu.reciprocal %44 {approx = true} : vector<16x1xf32> -> vector<16x1xf32>
    %46 = vector.broadcast %45 : vector<16x1xf32> to vector<16x16xf32>
    %47 = arith.mulf %42, %46 : vector<16x16xf32>
    %cst_20 = arith.constant dense<0.000000e+00> : vector<16x8xf32>
    %48 = tpu.matmul %47, %34, %cst_20 {dimension_numbers = #tpu.dot_dimension_numbers<[1], [0], [0], [1], [0, 0, 1, 1], [], []>} : vector<16x16xf32>, vector<16x8xf32>, vector<16x8xf32> -> vector<16x8xf32>
    %49 = vector.extract_strided_slice %10 {offsets = [0, 16], sizes = [16, 8], strides = [1, 1]} : vector<16x96xf32> to vector<16x8xf32>
    %cst_21 = arith.constant 0.353553385 : f32
    %50 = vector.broadcast %cst_21 : f32 to vector<16x8xf32>
    %51 = arith.mulf %49, %50 : vector<16x8xf32>
    %52 = vector.extract_strided_slice %10 {offsets = [0, 48], sizes = [16, 8], strides = [1, 1]} : vector<16x96xf32> to vector<16x8xf32>
    %53 = vector.extract_strided_slice %10 {offsets = [0, 80], sizes = [16, 8], strides = [1, 1]} : vector<16x96xf32> to vector<16x8xf32>
    %54 = tpu.transpose %52, [1, 0] : vector<16x8xf32> -> vector<8x16xf32>
    %cst_22 = arith.constant dense<0.000000e+00> : vector<16x16xf32>
    %55 = tpu.matmul %51, %54, %cst_22 {dimension_numbers = #tpu.dot_dimension_numbers<[1], [0], [0], [1], [0, 0, 1, 1], [], []>} : vector<16x8xf32>, vector<8x16xf32>, vector<16x16xf32> -> vector<16x16xf32>
    %56 = arith.addf %55, %3 : vector<16x16xf32>
    %cst_23 = arith.constant dense<0xFF800000> : vector<16xf32>
    %57 = vector.multi_reduction <maximumf>, %56, %cst_23 [1] : vector<16x16xf32> to vector<16xf32>
    %58 = vector.shape_cast %57 : vector<16xf32> to vector<16x1xf32>
    %59 = vector.broadcast %58 : vector<16x1xf32> to vector<16x16xf32>
    %60 = arith.subf %56, %59 : vector<16x16xf32>
    %61 = math.exp %60 : vector<16x16xf32>
    %cst_24 = arith.constant dense<0.000000e+00> : vector<16xf32>
    %62 = vector.multi_reduction <add>, %61, %cst_24 [1] : vector<16x16xf32> to vector<16xf32>
    %63 = vector.shape_cast %62 : vector<16xf32> to vector<16x1xf32>
    %64 = tpu.reciprocal %63 {approx = true} : vector<16x1xf32> -> vector<16x1xf32>
    %65 = vector.broadcast %64 : vector<16x1xf32> to vector<16x16xf32>
    %66 = arith.mulf %61, %65 : vector<16x16xf32>
    %cst_25 = arith.constant dense<0.000000e+00> : vector<16x8xf32>
    %67 = tpu.matmul %66, %53, %cst_25 {dimension_numbers = #tpu.dot_dimension_numbers<[1], [0], [0], [1], [0, 0, 1, 1], [], []>} : vector<16x16xf32>, vector<16x8xf32>, vector<16x8xf32> -> vector<16x8xf32>
    %68 = vector.extract_strided_slice %10 {offsets = [0, 24], sizes = [16, 8], strides = [1, 1]} : vector<16x96xf32> to vector<16x8xf32>
    %cst_26 = arith.constant 0.353553385 : f32
    %69 = vector.broadcast %cst_26 : f32 to vector<16x8xf32>
    %70 = arith.mulf %68, %69 : vector<16x8xf32>
    %71 = vector.extract_strided_slice %10 {offsets = [0, 56], sizes = [16, 8], strides = [1, 1]} : vector<16x96xf32> to vector<16x8xf32>
    %72 = vector.extract_strided_slice %10 {offsets = [0, 88], sizes = [16, 8], strides = [1, 1]} : vector<16x96xf32> to vector<16x8xf32>
    %73 = tpu.transpose %71, [1, 0] : vector<16x8xf32> -> vector<8x16xf32>
    %cst_27 = arith.constant dense<0.000000e+00> : vector<16x16xf32>
    %74 = tpu.matmul %70, %73, %cst_27 {dimension_numbers = #tpu.dot_dimension_numbers<[1], [0], [0], [1], [0, 0, 1, 1], [], []>} : vector<16x8xf32>, vector<8x16xf32>, vector<16x16xf32> -> vector<16x16xf32>
    %75 = arith.addf %74, %3 : vector<16x16xf32>
    %cst_28 = arith.constant dense<0xFF800000> : vector<16xf32>
    %76 = vector.multi_reduction <maximumf>, %75, %cst_28 [1] : vector<16x16xf32> to vector<16xf32>
    %77 = vector.shape_cast %76 : vector<16xf32> to vector<16x1xf32>
    %78 = vector.broadcast %77 : vector<16x1xf32> to vector<16x16xf32>
    %79 = arith.subf %75, %78 : vector<16x16xf32>
    %80 = math.exp %79 : vector<16x16xf32>
    %cst_29 = arith.constant dense<0.000000e+00> : vector<16xf32>
    %81 = vector.multi_reduction <add>, %80, %cst_29 [1] : vector<16x16xf32> to vector<16xf32>
    %82 = vector.shape_cast %81 : vector<16xf32> to vector<16x1xf32>
    %83 = tpu.reciprocal %82 {approx = true} : vector<16x1xf32> -> vector<16x1xf32>
    %84 = vector.broadcast %83 : vector<16x1xf32> to vector<16x16xf32>
    %85 = arith.mulf %80, %84 : vector<16x16xf32>
    %cst_30 = arith.constant dense<0.000000e+00> : vector<16x8xf32>
    %86 = tpu.matmul %85, %72, %cst_30 {dimension_numbers = #tpu.dot_dimension_numbers<[1], [0], [0], [1], [0, 0, 1, 1], [], []>} : vector<16x16xf32>, vector<16x8xf32>, vector<16x8xf32> -> vector<16x8xf32>
    %87 = tpu.concatenate %29, %48, %67, %86 in 1 : vector<16x8xf32>, vector<16x8xf32>, vector<16x8xf32>, vector<16x8xf32> -> vector<16x32xf32>
    %c0_31 = arith.constant 0 : index
    %c0_32 = arith.constant 0 : index
    %c0_33 = arith.constant 0 : index
    %88 = vector.load %arg6[%c0_31, %c0_32, %c0_33] : memref<2x32x32xf32, #tpu.memory_space<vmem>>, vector<1x32x32xf32>
    %89 = vector.shape_cast %88 : vector<1x32x32xf32> to vector<32x32xf32>
    %cst_34 = arith.constant dense<0.000000e+00> : vector<16x32xf32>
    %90 = tpu.matmul %87, %89, %cst_34 {dimension_numbers = #tpu.dot_dimension_numbers<[1], [0], [0], [1], [0, 0, 1, 1], [], []>} : vector<16x32xf32>, vector<32x32xf32>, vector<16x32xf32> -> vector<16x32xf32>
    %c0_35 = arith.constant 0 : index
    %c0_36 = arith.constant 0 : index
    %c0_37 = arith.constant 0 : index
    %91 = vector.load %arg7[%c0_35, %c0_36, %c0_37] : memref<2x1x32xf32, #tpu.memory_space<vmem>>, vector<1x1x32xf32>
    %92 = vector.shape_cast %91 : vector<1x1x32xf32> to vector<1x32xf32>
    %93 = vector.broadcast %92 : vector<1x32xf32> to vector<16x32xf32>
    %94 = arith.addf %90, %93 : vector<16x32xf32>
    %95 = arith.addf %2, %94 : vector<16x32xf32>
    %c0_38 = arith.constant 0 : index
    %c0_39 = arith.constant 0 : index
    %c0_40 = arith.constant 0 : index
    %96 = vector.load %arg8[%c0_38, %c0_39, %c0_40] : memref<2x1x32xf32, #tpu.memory_space<vmem>>, vector<1x1x32xf32>
    %97 = vector.shape_cast %96 : vector<1x1x32xf32> to vector<1x32xf32>
    %c0_41 = arith.constant 0 : index
    %c0_42 = arith.constant 0 : index
    %c0_43 = arith.constant 0 : index
    %98 = vector.load %arg9[%c0_41, %c0_42, %c0_43] : memref<2x1x32xf32, #tpu.memory_space<vmem>>, vector<1x1x32xf32>
    %99 = vector.shape_cast %98 : vector<1x1x32xf32> to vector<1x32xf32>
    %cst_44 = arith.constant dense<0.000000e+00> : vector<16xf32>
    %100 = vector.multi_reduction <add>, %95, %cst_44 [1] : vector<16x32xf32> to vector<16xf32>
    %101 = vector.shape_cast %100 : vector<16xf32> to vector<16x1xf32>
    %cst_45 = arith.constant 3.200000e+01 : f32
    %102 = vector.broadcast %cst_45 : f32 to vector<16x1xf32>
    %103 = arith.divf %101, %102 : vector<16x1xf32>
    %104 = vector.broadcast %103 : vector<16x1xf32> to vector<16x32xf32>
    %105 = arith.subf %95, %104 : vector<16x32xf32>
    %106 = arith.mulf %105, %105 : vector<16x32xf32>
    %cst_46 = arith.constant dense<0.000000e+00> : vector<16xf32>
    %107 = vector.multi_reduction <add>, %106, %cst_46 [1] : vector<16x32xf32> to vector<16xf32>
    %108 = vector.shape_cast %107 : vector<16xf32> to vector<16x1xf32>
    %cst_47 = arith.constant 3.200000e+01 : f32
    %109 = vector.broadcast %cst_47 : f32 to vector<16x1xf32>
    %110 = arith.divf %108, %109 : vector<16x1xf32>
    %cst_48 = arith.constant 9.99999974E-6 : f32
    %111 = vector.broadcast %cst_48 : f32 to vector<16x1xf32>
    %112 = arith.addf %110, %111 : vector<16x1xf32>
    %113 = math.rsqrt %112 : vector<16x1xf32>
    %114 = vector.broadcast %113 : vector<16x1xf32> to vector<16x32xf32>
    %115 = arith.mulf %105, %114 : vector<16x32xf32>
    %116 = vector.broadcast %97 : vector<1x32xf32> to vector<16x32xf32>
    %117 = arith.mulf %115, %116 : vector<16x32xf32>
    %118 = vector.broadcast %99 : vector<1x32xf32> to vector<16x32xf32>
    %119 = arith.addf %117, %118 : vector<16x32xf32>
    %c0_49 = arith.constant 0 : index
    %c0_50 = arith.constant 0 : index
    %c0_51 = arith.constant 0 : index
    %120 = vector.load %arg10[%c0_49, %c0_50, %c0_51] : memref<2x32x64xf32, #tpu.memory_space<vmem>>, vector<1x32x64xf32>
    %121 = vector.shape_cast %120 : vector<1x32x64xf32> to vector<32x64xf32>
    %cst_52 = arith.constant dense<0.000000e+00> : vector<16x64xf32>
    %122 = tpu.matmul %119, %121, %cst_52 {dimension_numbers = #tpu.dot_dimension_numbers<[1], [0], [0], [1], [0, 0, 1, 1], [], []>} : vector<16x32xf32>, vector<32x64xf32>, vector<16x64xf32> -> vector<16x64xf32>
    %c0_53 = arith.constant 0 : index
    %c0_54 = arith.constant 0 : index
    %c0_55 = arith.constant 0 : index
    %123 = vector.load %arg11[%c0_53, %c0_54, %c0_55] : memref<2x1x64xf32, #tpu.memory_space<vmem>>, vector<1x1x64xf32>
    %124 = vector.shape_cast %123 : vector<1x1x64xf32> to vector<1x64xf32>
    %125 = vector.broadcast %124 : vector<1x64xf32> to vector<16x64xf32>
    %126 = arith.addf %122, %125 : vector<16x64xf32>
    %cst_56 = arith.constant 0.000000e+00 : f32
    %127 = vector.broadcast %cst_56 : f32 to vector<16x64xf32>
    %128 = arith.maximumf %126, %127 : vector<16x64xf32>
    %c0_57 = arith.constant 0 : index
    %c0_58 = arith.constant 0 : index
    %c0_59 = arith.constant 0 : index
    %129 = vector.load %arg12[%c0_57, %c0_58, %c0_59] : memref<2x64x32xf32, #tpu.memory_space<vmem>>, vector<1x64x32xf32>
    %130 = vector.shape_cast %129 : vector<1x64x32xf32> to vector<64x32xf32>
    %cst_60 = arith.constant dense<0.000000e+00> : vector<16x32xf32>
    %131 = tpu.matmul %128, %130, %cst_60 {dimension_numbers = #tpu.dot_dimension_numbers<[1], [0], [0], [1], [0, 0, 1, 1], [], []>} : vector<16x64xf32>, vector<64x32xf32>, vector<16x32xf32> -> vector<16x32xf32>
    %c0_61 = arith.constant 0 : index
    %c0_62 = arith.constant 0 : index
    %c0_63 = arith.constant 0 : index
    %132 = vector.load %arg13[%c0_61, %c0_62, %c0_63] : memref<2x1x32xf32, #tpu.memory_space<vmem>>, vector<1x1x32xf32>
    %133 = vector.shape_cast %132 : vector<1x1x32xf32> to vector<1x32xf32>
    %134 = vector.broadcast %133 : vector<1x32xf32> to vector<16x32xf32>
    %135 = arith.addf %131, %134 : vector<16x32xf32>
    %136 = arith.addf %119, %135 : vector<16x32xf32>
    %c0_64 = arith.constant 0 : index
    %c0_65 = arith.constant 0 : index
    %c0_66 = arith.constant 0 : index
    %137 = vector.load %arg14[%c0_64, %c0_65, %c0_66] : memref<2x1x32xf32, #tpu.memory_space<vmem>>, vector<1x1x32xf32>
    %138 = vector.shape_cast %137 : vector<1x1x32xf32> to vector<1x32xf32>
    %c0_67 = arith.constant 0 : index
    %c0_68 = arith.constant 0 : index
    %c0_69 = arith.constant 0 : index
    %139 = vector.load %arg15[%c0_67, %c0_68, %c0_69] : memref<2x1x32xf32, #tpu.memory_space<vmem>>, vector<1x1x32xf32>
    %140 = vector.shape_cast %139 : vector<1x1x32xf32> to vector<1x32xf32>
    %cst_70 = arith.constant dense<0.000000e+00> : vector<16xf32>
    %141 = vector.multi_reduction <add>, %136, %cst_70 [1] : vector<16x32xf32> to vector<16xf32>
    %142 = vector.shape_cast %141 : vector<16xf32> to vector<16x1xf32>
    %cst_71 = arith.constant 3.200000e+01 : f32
    %143 = vector.broadcast %cst_71 : f32 to vector<16x1xf32>
    %144 = arith.divf %142, %143 : vector<16x1xf32>
    %145 = vector.broadcast %144 : vector<16x1xf32> to vector<16x32xf32>
    %146 = arith.subf %136, %145 : vector<16x32xf32>
    %147 = arith.mulf %146, %146 : vector<16x32xf32>
    %cst_72 = arith.constant dense<0.000000e+00> : vector<16xf32>
    %148 = vector.multi_reduction <add>, %147, %cst_72 [1] : vector<16x32xf32> to vector<16xf32>
    %149 = vector.shape_cast %148 : vector<16xf32> to vector<16x1xf32>
    %cst_73 = arith.constant 3.200000e+01 : f32
    %150 = vector.broadcast %cst_73 : f32 to vector<16x1xf32>
    %151 = arith.divf %149, %150 : vector<16x1xf32>
    %cst_74 = arith.constant 9.99999974E-6 : f32
    %152 = vector.broadcast %cst_74 : f32 to vector<16x1xf32>
    %153 = arith.addf %151, %152 : vector<16x1xf32>
    %154 = math.rsqrt %153 : vector<16x1xf32>
    %155 = vector.broadcast %154 : vector<16x1xf32> to vector<16x32xf32>
    %156 = arith.mulf %146, %155 : vector<16x32xf32>
    %157 = vector.broadcast %138 : vector<1x32xf32> to vector<16x32xf32>
    %158 = arith.mulf %156, %157 : vector<16x32xf32>
    %159 = vector.broadcast %140 : vector<1x32xf32> to vector<16x32xf32>
    %160 = arith.addf %158, %159 : vector<16x32xf32>
    %c1 = arith.constant 1 : index
    %c0_75 = arith.constant 0 : index
    %c0_76 = arith.constant 0 : index
    %161 = vector.load %arg4[%c1, %c0_75, %c0_76] : memref<2x32x96xf32, #tpu.memory_space<vmem>>, vector<1x32x96xf32>
    %162 = vector.shape_cast %161 : vector<1x32x96xf32> to vector<32x96xf32>
    %cst_77 = arith.constant dense<0.000000e+00> : vector<16x96xf32>
    %163 = tpu.matmul %160, %162, %cst_77 {dimension_numbers = #tpu.dot_dimension_numbers<[1], [0], [0], [1], [0, 0, 1, 1], [], []>} : vector<16x32xf32>, vector<32x96xf32>, vector<16x96xf32> -> vector<16x96xf32>
    %c1_78 = arith.constant 1 : index
    %c0_79 = arith.constant 0 : index
    %c0_80 = arith.constant 0 : index
    %164 = vector.load %arg5[%c1_78, %c0_79, %c0_80] : memref<2x1x96xf32, #tpu.memory_space<vmem>>, vector<1x1x96xf32>
    %165 = vector.shape_cast %164 : vector<1x1x96xf32> to vector<1x96xf32>
    %166 = vector.broadcast %165 : vector<1x96xf32> to vector<16x96xf32>
    %167 = arith.addf %163, %166 : vector<16x96xf32>
    %168 = vector.extract_strided_slice %167 {offsets = [0, 0], sizes = [16, 8], strides = [1, 1]} : vector<16x96xf32> to vector<16x8xf32>
    %cst_81 = arith.constant 0.353553385 : f32
    %169 = vector.broadcast %cst_81 : f32 to vector<16x8xf32>
    %170 = arith.mulf %168, %169 : vector<16x8xf32>
    %171 = vector.extract_strided_slice %167 {offsets = [0, 32], sizes = [16, 8], strides = [1, 1]} : vector<16x96xf32> to vector<16x8xf32>
    %172 = vector.extract_strided_slice %167 {offsets = [0, 64], sizes = [16, 8], strides = [1, 1]} : vector<16x96xf32> to vector<16x8xf32>
    %173 = tpu.transpose %171, [1, 0] : vector<16x8xf32> -> vector<8x16xf32>
    %cst_82 = arith.constant dense<0.000000e+00> : vector<16x16xf32>
    %174 = tpu.matmul %170, %173, %cst_82 {dimension_numbers = #tpu.dot_dimension_numbers<[1], [0], [0], [1], [0, 0, 1, 1], [], []>} : vector<16x8xf32>, vector<8x16xf32>, vector<16x16xf32> -> vector<16x16xf32>
    %175 = arith.addf %174, %3 : vector<16x16xf32>
    %cst_83 = arith.constant dense<0xFF800000> : vector<16xf32>
    %176 = vector.multi_reduction <maximumf>, %175, %cst_83 [1] : vector<16x16xf32> to vector<16xf32>
    %177 = vector.shape_cast %176 : vector<16xf32> to vector<16x1xf32>
    %178 = vector.broadcast %177 : vector<16x1xf32> to vector<16x16xf32>
    %179 = arith.subf %175, %178 : vector<16x16xf32>
    %180 = math.exp %179 : vector<16x16xf32>
    %cst_84 = arith.constant dense<0.000000e+00> : vector<16xf32>
    %181 = vector.multi_reduction <add>, %180, %cst_84 [1] : vector<16x16xf32> to vector<16xf32>
    %182 = vector.shape_cast %181 : vector<16xf32> to vector<16x1xf32>
    %183 = tpu.reciprocal %182 {approx = true} : vector<16x1xf32> -> vector<16x1xf32>
    %184 = vector.broadcast %183 : vector<16x1xf32> to vector<16x16xf32>
    %185 = arith.mulf %180, %184 : vector<16x16xf32>
    %cst_85 = arith.constant dense<0.000000e+00> : vector<16x8xf32>
    %186 = tpu.matmul %185, %172, %cst_85 {dimension_numbers = #tpu.dot_dimension_numbers<[1], [0], [0], [1], [0, 0, 1, 1], [], []>} : vector<16x16xf32>, vector<16x8xf32>, vector<16x8xf32> -> vector<16x8xf32>
    %187 = vector.extract_strided_slice %167 {offsets = [0, 8], sizes = [16, 8], strides = [1, 1]} : vector<16x96xf32> to vector<16x8xf32>
    %cst_86 = arith.constant 0.353553385 : f32
    %188 = vector.broadcast %cst_86 : f32 to vector<16x8xf32>
    %189 = arith.mulf %187, %188 : vector<16x8xf32>
    %190 = vector.extract_strided_slice %167 {offsets = [0, 40], sizes = [16, 8], strides = [1, 1]} : vector<16x96xf32> to vector<16x8xf32>
    %191 = vector.extract_strided_slice %167 {offsets = [0, 72], sizes = [16, 8], strides = [1, 1]} : vector<16x96xf32> to vector<16x8xf32>
    %192 = tpu.transpose %190, [1, 0] : vector<16x8xf32> -> vector<8x16xf32>
    %cst_87 = arith.constant dense<0.000000e+00> : vector<16x16xf32>
    %193 = tpu.matmul %189, %192, %cst_87 {dimension_numbers = #tpu.dot_dimension_numbers<[1], [0], [0], [1], [0, 0, 1, 1], [], []>} : vector<16x8xf32>, vector<8x16xf32>, vector<16x16xf32> -> vector<16x16xf32>
    %194 = arith.addf %193, %3 : vector<16x16xf32>
    %cst_88 = arith.constant dense<0xFF800000> : vector<16xf32>
    %195 = vector.multi_reduction <maximumf>, %194, %cst_88 [1] : vector<16x16xf32> to vector<16xf32>
    %196 = vector.shape_cast %195 : vector<16xf32> to vector<16x1xf32>
    %197 = vector.broadcast %196 : vector<16x1xf32> to vector<16x16xf32>
    %198 = arith.subf %194, %197 : vector<16x16xf32>
    %199 = math.exp %198 : vector<16x16xf32>
    %cst_89 = arith.constant dense<0.000000e+00> : vector<16xf32>
    %200 = vector.multi_reduction <add>, %199, %cst_89 [1] : vector<16x16xf32> to vector<16xf32>
    %201 = vector.shape_cast %200 : vector<16xf32> to vector<16x1xf32>
    %202 = tpu.reciprocal %201 {approx = true} : vector<16x1xf32> -> vector<16x1xf32>
    %203 = vector.broadcast %202 : vector<16x1xf32> to vector<16x16xf32>
    %204 = arith.mulf %199, %203 : vector<16x16xf32>
    %cst_90 = arith.constant dense<0.000000e+00> : vector<16x8xf32>
    %205 = tpu.matmul %204, %191, %cst_90 {dimension_numbers = #tpu.dot_dimension_numbers<[1], [0], [0], [1], [0, 0, 1, 1], [], []>} : vector<16x16xf32>, vector<16x8xf32>, vector<16x8xf32> -> vector<16x8xf32>
    %206 = vector.extract_strided_slice %167 {offsets = [0, 16], sizes = [16, 8], strides = [1, 1]} : vector<16x96xf32> to vector<16x8xf32>
    %cst_91 = arith.constant 0.353553385 : f32
    %207 = vector.broadcast %cst_91 : f32 to vector<16x8xf32>
    %208 = arith.mulf %206, %207 : vector<16x8xf32>
    %209 = vector.extract_strided_slice %167 {offsets = [0, 48], sizes = [16, 8], strides = [1, 1]} : vector<16x96xf32> to vector<16x8xf32>
    %210 = vector.extract_strided_slice %167 {offsets = [0, 80], sizes = [16, 8], strides = [1, 1]} : vector<16x96xf32> to vector<16x8xf32>
    %211 = tpu.transpose %209, [1, 0] : vector<16x8xf32> -> vector<8x16xf32>
    %cst_92 = arith.constant dense<0.000000e+00> : vector<16x16xf32>
    %212 = tpu.matmul %208, %211, %cst_92 {dimension_numbers = #tpu.dot_dimension_numbers<[1], [0], [0], [1], [0, 0, 1, 1], [], []>} : vector<16x8xf32>, vector<8x16xf32>, vector<16x16xf32> -> vector<16x16xf32>
    %213 = arith.addf %212, %3 : vector<16x16xf32>
    %cst_93 = arith.constant dense<0xFF800000> : vector<16xf32>
    %214 = vector.multi_reduction <maximumf>, %213, %cst_93 [1] : vector<16x16xf32> to vector<16xf32>
    %215 = vector.shape_cast %214 : vector<16xf32> to vector<16x1xf32>
    %216 = vector.broadcast %215 : vector<16x1xf32> to vector<16x16xf32>
    %217 = arith.subf %213, %216 : vector<16x16xf32>
    %218 = math.exp %217 : vector<16x16xf32>
    %cst_94 = arith.constant dense<0.000000e+00> : vector<16xf32>
    %219 = vector.multi_reduction <add>, %218, %cst_94 [1] : vector<16x16xf32> to vector<16xf32>
    %220 = vector.shape_cast %219 : vector<16xf32> to vector<16x1xf32>
    %221 = tpu.reciprocal %220 {approx = true} : vector<16x1xf32> -> vector<16x1xf32>
    %222 = vector.broadcast %221 : vector<16x1xf32> to vector<16x16xf32>
    %223 = arith.mulf %218, %222 : vector<16x16xf32>
    %cst_95 = arith.constant dense<0.000000e+00> : vector<16x8xf32>
    %224 = tpu.matmul %223, %210, %cst_95 {dimension_numbers = #tpu.dot_dimension_numbers<[1], [0], [0], [1], [0, 0, 1, 1], [], []>} : vector<16x16xf32>, vector<16x8xf32>, vector<16x8xf32> -> vector<16x8xf32>
    %225 = vector.extract_strided_slice %167 {offsets = [0, 24], sizes = [16, 8], strides = [1, 1]} : vector<16x96xf32> to vector<16x8xf32>
    %cst_96 = arith.constant 0.353553385 : f32
    %226 = vector.broadcast %cst_96 : f32 to vector<16x8xf32>
    %227 = arith.mulf %225, %226 : vector<16x8xf32>
    %228 = vector.extract_strided_slice %167 {offsets = [0, 56], sizes = [16, 8], strides = [1, 1]} : vector<16x96xf32> to vector<16x8xf32>
    %229 = vector.extract_strided_slice %167 {offsets = [0, 88], sizes = [16, 8], strides = [1, 1]} : vector<16x96xf32> to vector<16x8xf32>
    %230 = tpu.transpose %228, [1, 0] : vector<16x8xf32> -> vector<8x16xf32>
    %cst_97 = arith.constant dense<0.000000e+00> : vector<16x16xf32>
    %231 = tpu.matmul %227, %230, %cst_97 {dimension_numbers = #tpu.dot_dimension_numbers<[1], [0], [0], [1], [0, 0, 1, 1], [], []>} : vector<16x8xf32>, vector<8x16xf32>, vector<16x16xf32> -> vector<16x16xf32>
    %232 = arith.addf %231, %3 : vector<16x16xf32>
    %cst_98 = arith.constant dense<0xFF800000> : vector<16xf32>
    %233 = vector.multi_reduction <maximumf>, %232, %cst_98 [1] : vector<16x16xf32> to vector<16xf32>
    %234 = vector.shape_cast %233 : vector<16xf32> to vector<16x1xf32>
    %235 = vector.broadcast %234 : vector<16x1xf32> to vector<16x16xf32>
    %236 = arith.subf %232, %235 : vector<16x16xf32>
    %237 = math.exp %236 : vector<16x16xf32>
    %cst_99 = arith.constant dense<0.000000e+00> : vector<16xf32>
    %238 = vector.multi_reduction <add>, %237, %cst_99 [1] : vector<16x16xf32> to vector<16xf32>
    %239 = vector.shape_cast %238 : vector<16xf32> to vector<16x1xf32>
    %240 = tpu.reciprocal %239 {approx = true} : vector<16x1xf32> -> vector<16x1xf32>
    %241 = vector.broadcast %240 : vector<16x1xf32> to vector<16x16xf32>
    %242 = arith.mulf %237, %241 : vector<16x16xf32>
    %cst_100 = arith.constant dense<0.000000e+00> : vector<16x8xf32>
    %243 = tpu.matmul %242, %229, %cst_100 {dimension_numbers = #tpu.dot_dimension_numbers<[1], [0], [0], [1], [0, 0, 1, 1], [], []>} : vector<16x16xf32>, vector<16x8xf32>, vector<16x8xf32> -> vector<16x8xf32>
    %244 = tpu.concatenate %186, %205, %224, %243 in 1 : vector<16x8xf32>, vector<16x8xf32>, vector<16x8xf32>, vector<16x8xf32> -> vector<16x32xf32>
    %c1_101 = arith.constant 1 : index
    %c0_102 = arith.constant 0 : index
    %c0_103 = arith.constant 0 : index
    %245 = vector.load %arg6[%c1_101, %c0_102, %c0_103] : memref<2x32x32xf32, #tpu.memory_space<vmem>>, vector<1x32x32xf32>
    %246 = vector.shape_cast %245 : vector<1x32x32xf32> to vector<32x32xf32>
    %cst_104 = arith.constant dense<0.000000e+00> : vector<16x32xf32>
    %247 = tpu.matmul %244, %246, %cst_104 {dimension_numbers = #tpu.dot_dimension_numbers<[1], [0], [0], [1], [0, 0, 1, 1], [], []>} : vector<16x32xf32>, vector<32x32xf32>, vector<16x32xf32> -> vector<16x32xf32>
    %c1_105 = arith.constant 1 : index
    %c0_106 = arith.constant 0 : index
    %c0_107 = arith.constant 0 : index
    %248 = vector.load %arg7[%c1_105, %c0_106, %c0_107] : memref<2x1x32xf32, #tpu.memory_space<vmem>>, vector<1x1x32xf32>
    %249 = vector.shape_cast %248 : vector<1x1x32xf32> to vector<1x32xf32>
    %250 = vector.broadcast %249 : vector<1x32xf32> to vector<16x32xf32>
    %251 = arith.addf %247, %250 : vector<16x32xf32>
    %252 = arith.addf %160, %251 : vector<16x32xf32>
    %c1_108 = arith.constant 1 : index
    %c0_109 = arith.constant 0 : index
    %c0_110 = arith.constant 0 : index
    %253 = vector.load %arg8[%c1_108, %c0_109, %c0_110] : memref<2x1x32xf32, #tpu.memory_space<vmem>>, vector<1x1x32xf32>
    %254 = vector.shape_cast %253 : vector<1x1x32xf32> to vector<1x32xf32>
    %c1_111 = arith.constant 1 : index
    %c0_112 = arith.constant 0 : index
    %c0_113 = arith.constant 0 : index
    %255 = vector.load %arg9[%c1_111, %c0_112, %c0_113] : memref<2x1x32xf32, #tpu.memory_space<vmem>>, vector<1x1x32xf32>
    %256 = vector.shape_cast %255 : vector<1x1x32xf32> to vector<1x32xf32>
    %cst_114 = arith.constant dense<0.000000e+00> : vector<16xf32>
    %257 = vector.multi_reduction <add>, %252, %cst_114 [1] : vector<16x32xf32> to vector<16xf32>
    %258 = vector.shape_cast %257 : vector<16xf32> to vector<16x1xf32>
    %cst_115 = arith.constant 3.200000e+01 : f32
    %259 = vector.broadcast %cst_115 : f32 to vector<16x1xf32>
    %260 = arith.divf %258, %259 : vector<16x1xf32>
    %261 = vector.broadcast %260 : vector<16x1xf32> to vector<16x32xf32>
    %262 = arith.subf %252, %261 : vector<16x32xf32>
    %263 = arith.mulf %262, %262 : vector<16x32xf32>
    %cst_116 = arith.constant dense<0.000000e+00> : vector<16xf32>
    %264 = vector.multi_reduction <add>, %263, %cst_116 [1] : vector<16x32xf32> to vector<16xf32>
    %265 = vector.shape_cast %264 : vector<16xf32> to vector<16x1xf32>
    %cst_117 = arith.constant 3.200000e+01 : f32
    %266 = vector.broadcast %cst_117 : f32 to vector<16x1xf32>
    %267 = arith.divf %265, %266 : vector<16x1xf32>
    %cst_118 = arith.constant 9.99999974E-6 : f32
    %268 = vector.broadcast %cst_118 : f32 to vector<16x1xf32>
    %269 = arith.addf %267, %268 : vector<16x1xf32>
    %270 = math.rsqrt %269 : vector<16x1xf32>
    %271 = vector.broadcast %270 : vector<16x1xf32> to vector<16x32xf32>
    %272 = arith.mulf %262, %271 : vector<16x32xf32>
    %273 = vector.broadcast %254 : vector<1x32xf32> to vector<16x32xf32>
    %274 = arith.mulf %272, %273 : vector<16x32xf32>
    %275 = vector.broadcast %256 : vector<1x32xf32> to vector<16x32xf32>
    %276 = arith.addf %274, %275 : vector<16x32xf32>
    %c1_119 = arith.constant 1 : index
    %c0_120 = arith.constant 0 : index
    %c0_121 = arith.constant 0 : index
    %277 = vector.load %arg10[%c1_119, %c0_120, %c0_121] : memref<2x32x64xf32, #tpu.memory_space<vmem>>, vector<1x32x64xf32>
    %278 = vector.shape_cast %277 : vector<1x32x64xf32> to vector<32x64xf32>
    %cst_122 = arith.constant dense<0.000000e+00> : vector<16x64xf32>
    %279 = tpu.matmul %276, %278, %cst_122 {dimension_numbers = #tpu.dot_dimension_numbers<[1], [0], [0], [1], [0, 0, 1, 1], [], []>} : vector<16x32xf32>, vector<32x64xf32>, vector<16x64xf32> -> vector<16x64xf32>
    %c1_123 = arith.constant 1 : index
    %c0_124 = arith.constant 0 : index
    %c0_125 = arith.constant 0 : index
    %280 = vector.load %arg11[%c1_123, %c0_124, %c0_125] : memref<2x1x64xf32, #tpu.memory_space<vmem>>, vector<1x1x64xf32>
    %281 = vector.shape_cast %280 : vector<1x1x64xf32> to vector<1x64xf32>
    %282 = vector.broadcast %281 : vector<1x64xf32> to vector<16x64xf32>
    %283 = arith.addf %279, %282 : vector<16x64xf32>
    %cst_126 = arith.constant 0.000000e+00 : f32
    %284 = vector.broadcast %cst_126 : f32 to vector<16x64xf32>
    %285 = arith.maximumf %283, %284 : vector<16x64xf32>
    %c1_127 = arith.constant 1 : index
    %c0_128 = arith.constant 0 : index
    %c0_129 = arith.constant 0 : index
    %286 = vector.load %arg12[%c1_127, %c0_128, %c0_129] : memref<2x64x32xf32, #tpu.memory_space<vmem>>, vector<1x64x32xf32>
    %287 = vector.shape_cast %286 : vector<1x64x32xf32> to vector<64x32xf32>
    %cst_130 = arith.constant dense<0.000000e+00> : vector<16x32xf32>
    %288 = tpu.matmul %285, %287, %cst_130 {dimension_numbers = #tpu.dot_dimension_numbers<[1], [0], [0], [1], [0, 0, 1, 1], [], []>} : vector<16x64xf32>, vector<64x32xf32>, vector<16x32xf32> -> vector<16x32xf32>
    %c1_131 = arith.constant 1 : index
    %c0_132 = arith.constant 0 : index
    %c0_133 = arith.constant 0 : index
    %289 = vector.load %arg13[%c1_131, %c0_132, %c0_133] : memref<2x1x32xf32, #tpu.memory_space<vmem>>, vector<1x1x32xf32>
    %290 = vector.shape_cast %289 : vector<1x1x32xf32> to vector<1x32xf32>
    %291 = vector.broadcast %290 : vector<1x32xf32> to vector<16x32xf32>
    %292 = arith.addf %288, %291 : vector<16x32xf32>
    %293 = arith.addf %276, %292 : vector<16x32xf32>
    %c1_134 = arith.constant 1 : index
    %c0_135 = arith.constant 0 : index
    %c0_136 = arith.constant 0 : index
    %294 = vector.load %arg14[%c1_134, %c0_135, %c0_136] : memref<2x1x32xf32, #tpu.memory_space<vmem>>, vector<1x1x32xf32>
    %295 = vector.shape_cast %294 : vector<1x1x32xf32> to vector<1x32xf32>
    %c1_137 = arith.constant 1 : index
    %c0_138 = arith.constant 0 : index
    %c0_139 = arith.constant 0 : index
    %296 = vector.load %arg15[%c1_137, %c0_138, %c0_139] : memref<2x1x32xf32, #tpu.memory_space<vmem>>, vector<1x1x32xf32>
    %297 = vector.shape_cast %296 : vector<1x1x32xf32> to vector<1x32xf32>
    %cst_140 = arith.constant dense<0.000000e+00> : vector<16xf32>
    %298 = vector.multi_reduction <add>, %293, %cst_140 [1] : vector<16x32xf32> to vector<16xf32>
    %299 = vector.shape_cast %298 : vector<16xf32> to vector<16x1xf32>
    %cst_141 = arith.constant 3.200000e+01 : f32
    %300 = vector.broadcast %cst_141 : f32 to vector<16x1xf32>
    %301 = arith.divf %299, %300 : vector<16x1xf32>
    %302 = vector.broadcast %301 : vector<16x1xf32> to vector<16x32xf32>
    %303 = arith.subf %293, %302 : vector<16x32xf32>
    %304 = arith.mulf %303, %303 : vector<16x32xf32>
    %cst_142 = arith.constant dense<0.000000e+00> : vector<16xf32>
    %305 = vector.multi_reduction <add>, %304, %cst_142 [1] : vector<16x32xf32> to vector<16xf32>
    %306 = vector.shape_cast %305 : vector<16xf32> to vector<16x1xf32>
    %cst_143 = arith.constant 3.200000e+01 : f32
    %307 = vector.broadcast %cst_143 : f32 to vector<16x1xf32>
    %308 = arith.divf %306, %307 : vector<16x1xf32>
    %cst_144 = arith.constant 9.99999974E-6 : f32
    %309 = vector.broadcast %cst_144 : f32 to vector<16x1xf32>
    %310 = arith.addf %308, %309 : vector<16x1xf32>
    %311 = math.rsqrt %310 : vector<16x1xf32>
    %312 = vector.broadcast %311 : vector<16x1xf32> to vector<16x32xf32>
    %313 = arith.mulf %303, %312 : vector<16x32xf32>
    %314 = vector.broadcast %295 : vector<1x32xf32> to vector<16x32xf32>
    %315 = arith.mulf %313, %314 : vector<16x32xf32>
    %316 = vector.broadcast %297 : vector<1x32xf32> to vector<16x32xf32>
    %317 = arith.addf %315, %316 : vector<16x32xf32>
    %c0_145 = arith.constant 0 : index
    %c0_146 = arith.constant 0 : index
    %318 = vector.load %arg16[%c0_145, %c0_146] : memref<16x32xf32, #tpu.memory_space<vmem>>, vector<16x32xf32>
    tpu.vector_store %arg16[%c0_145, %c0_146], %317 {strides = array<i32>} : memref<16x32xf32, #tpu.memory_space<vmem>>, vector<16x32xf32>,
    return
  }
  func.func @transform_0(%arg0: i32) -> (i32, i32) {
    %c0_i32 = arith.constant 0 : i32
    %c0_i32_0 = arith.constant 0 : i32
    %c0_i32_1 = arith.constant 0 : i32
    return %c0_i32, %c0_i32_0 : i32, i32
  }
  func.func @transform_1(%arg0: i32) -> (i32, i32) {
    %c0_i32 = arith.constant 0 : i32
    %c0_i32_0 = arith.constant 0 : i32
    %c0_i32_1 = arith.constant 0 : i32
    return %c0_i32, %c0_i32_0 : i32, i32
  }
  func.func @transform_2(%arg0: i32) -> (i32, i32) {
    %c0_i32 = arith.constant 0 : i32
    %c0_i32_0 = arith.constant 0 : i32
    %c0_i32_1 = arith.constant 0 : i32
    return %c0_i32, %c0_i32_0 : i32, i32
  }
  func.func @transform_3(%arg0: i32) -> (i32, i32, i32) {
    %c0_i32 = arith.constant 0 : i32
    %c0_i32_0 = arith.constant 0 : i32
    %c0_i32_1 = arith.constant 0 : i32
    %c0_i32_2 = arith.constant 0 : i32
    return %c0_i32, %c0_i32_0, %c0_i32_1 : i32, i32, i32
  }
  func.func @transform_4(%arg0: i32) -> (i32, i32, i32) {
    %c0_i32 = arith.constant 0 : i32
    %c0_i32_0 = arith.constant 0 : i32
    %c0_i32_1 = arith.constant 0 : i32
    %c0_i32_2 = arith.constant 0 : i32
    return %c0_i32, %c0_i32_0, %c0_i32_1 : i32, i32, i32
  }
  func.func @transform_5(%arg0: i32) -> (i32, i32, i32) {
    %c0_i32 = arith.constant 0 : i32
    %c0_i32_0 = arith.constant 0 : i32
    %c0_i32_1 = arith.constant 0 : i32
    %c0_i32_2 = arith.constant 0 : i32
    return %c0_i32, %c0_i32_0, %c0_i32_1 : i32, i32, i32
  }
  func.func @transform_6(%arg0: i32) -> (i32, i32, i32) {
    %c0_i32 = arith.constant 0 : i32
    %c0_i32_0 = arith.constant 0 : i32
    %c0_i32_1 = arith.constant 0 : i32
    %c0_i32_2 = arith.constant 0 : i32
    return %c0_i32, %c0_i32_0, %c0_i32_1 : i32, i32, i32
  }
  func.func @transform_7(%arg0: i32) -> (i32, i32, i32) {
    %c0_i32 = arith.constant 0 : i32
    %c0_i32_0 = arith.constant 0 : i32
    %c0_i32_1 = arith.constant 0 : i32
    %c0_i32_2 = arith.constant 0 : i32
    return %c0_i32, %c0_i32_0, %c0_i32_1 : i32, i32, i32
  }
  func.func @transform_8(%arg0: i32) -> (i32, i32, i32) {
    %c0_i32 = arith.constant 0 : i32
    %c0_i32_0 = arith.constant 0 : i32
    %c0_i32_1 = arith.constant 0 : i32
    %c0_i32_2 = arith.constant 0 : i32
    return %c0_i32, %c0_i32_0, %c0_i32_1 : i32, i32, i32
  }
  func.func @transform_9(%arg0: i32) -> (i32, i32, i32) {
    %c0_i32 = arith.constant 0 : i32
    %c0_i32_0 = arith.constant 0 : i32
    %c0_i32_1 = arith.constant 0 : i32
    %c0_i32_2 = arith.constant 0 : i32
    return %c0_i32, %c0_i32_0, %c0_i32_1 : i32, i32, i32
  }
  func.func @transform_10(%arg0: i32) -> (i32, i32, i32) {
    %c0_i32 = arith.constant 0 : i32
    %c0_i32_0 = arith.constant 0 : i32
    %c0_i32_1 = arith.constant 0 : i32
    %c0_i32_2 = arith.constant 0 : i32
    return %c0_i32, %c0_i32_0, %c0_i32_1 : i32, i32, i32
  }
  func.func @transform_11(%arg0: i32) -> (i32, i32, i32) {
    %c0_i32 = arith.constant 0 : i32
    %c0_i32_0 = arith.constant 0 : i32
    %c0_i32_1 = arith.constant 0 : i32
    %c0_i32_2 = arith.constant 0 : i32
    return %c0_i32, %c0_i32_0, %c0_i32_1 : i32, i32, i32
  }
  func.func @transform_12(%arg0: i32) -> (i32, i32, i32) {
    %c0_i32 = arith.constant 0 : i32
    %c0_i32_0 = arith.constant 0 : i32
    %c0_i32_1 = arith.constant 0 : i32
    %c0_i32_2 = arith.constant 0 : i32
    return %c0_i32, %c0_i32_0, %c0_i32_1 : i32, i32, i32
  }
  func.func @transform_13(%arg0: i32) -> (i32, i32, i32) {
    %c0_i32 = arith.constant 0 : i32
    %c0_i32_0 = arith.constant 0 : i32
    %c0_i32_1 = arith.constant 0 : i32
    %c0_i32_2 = arith.constant 0 : i32
    return %c0_i32, %c0_i32_0, %c0_i32_1 : i32, i32, i32
  }
  func.func @transform_14(%arg0: i32) -> (i32, i32, i32) {
    %c0_i32 = arith.constant 0 : i32
    %c0_i32_0 = arith.constant 0 : i32
    %c0_i32_1 = arith.constant 0 : i32
    %c0_i32_2 = arith.constant 0 : i32
    return %c0_i32, %c0_i32_0, %c0_i32_1 : i32, i32, i32
  }
  func.func @transform_15(%arg0: i32) -> (i32, i32) {
    %c0_i32 = arith.constant 0 : i32
    %c0_i32_0 = arith.constant 0 : i32
    %c0_i32_1 = arith.constant 0 : i32
    return %c0_i32, %c0_i32_0 : i32, i32
  }
}

</mosaic_0001>

<bundles_post_ra>
// kernel: tpu_custom_call.1
= control target key start
LH: loop header
LB: loop body
LE: loop exit
PB: predicated region body
PF: predicated region fallthrough
CT: control target
= control target key end

     0   :  { %20 = vsyncpa [#allocation3], 0  ;;  %s2567_s0 = inlined_call_operand.hbm [shape: f32[16,32], index: 0, kind: input, shape index: {}]   ;;  %s2568_s1 = inlined_call_operand.hbm [shape: f32[16,32], index: 1, kind: input, shape index: {}]   ;;  %s2569_s2 = inlined_call_operand.hbm [shape: f32[16,16], index: 2, kind: input, shape index: {}]   ;;  %s2570_s3 = inlined_call_operand.vmem [shape: f32[2,32,96], index: 3, kind: input, shape index: {}]   ;;  %s2571_s4 = inlined_call_operand.vmem [shape: f32[2,1,96], index: 4, kind: input, shape index: {}]   ;;  %s2572_s5 = inlined_call_operand.vmem [shape: f32[2,32,32], index: 5, kind: input, shape index: {}]   ;;  %s2573_s6 = inlined_call_operand.vmem [shape: f32[2,1,32], index: 6, kind: input, shape index: {}]   ;;  %s2574_s7 = inlined_call_operand.hbm [shape: f32[2,1,32], index: 7, kind: input, shape index: {}]   ;;  %s2575_s8 = inlined_call_operand.hbm [shape: f32[2,1,32], index: 8, kind: input, shape index: {}]   ;;  %s2576_s9 = inlined_call_operand.vmem [shape: f32[2,32,64], index: 9, kind: input, shape index: {}]   ;;  %s2577_s10 = inlined_call_operand.vmem [shape: f32[2,1,64], index: 10, kind: input, shape index: {}]   ;;  %s2578_s11 = inlined_call_operand.vmem [shape: f32[2,64,32], index: 11, kind: input, shape index: {}]   ;;  %s2579_s12 = inlined_call_operand.vmem [shape: f32[2,1,32], index: 12, kind: input, shape index: {}]   ;;  %s2580_s13 = inlined_call_operand.vmem [shape: f32[2,1,32], index: 13, kind: input, shape index: {}]   ;;  %s2581_s14 = inlined_call_operand.hbm [shape: f32[2,1,32], index: 14, kind: input, shape index: {}]   ;;  %s2582_s15 = inlined_call_operand.hbm [shape: f32[16,32], index: 15, kind: output, shape index: {}]  }
   0x1   :  { %21 = vsyncpa [#allocation6], 0 }
   0x2   :  { %22 = vsyncpa [#allocation9], 0 }
   0x3   :  { %23 = vsyncpa [#allocation12], 0 }
   0x4   :  { %24 = vsyncpa [#allocation4], 0  ;;  %s42_s20 = sshll.u32 %s2568_s1, 4  ;;  %s2002_s21 = smov [#allocation5]   ;;  %s43_s20 = int_to_ptr.hbm [resolvable:$true] %s42_s20 }
   0x5   :  { %s44_s22 = sshll.u32 %s2002_s21, 4  ;;  %s76_s25 = sshll.u32 %s2574_s7, 4  ;;  %s45_s22 = int_to_ptr.vmem [resolvable:$true] %s44_s22  ;;  %s77_s25 = int_to_ptr.hbm [resolvable:$true] %s76_s25 }
   0x6   :  { %s2583_s26 = smov 128   ;;  %s2004_s27 = smov 8  }
   0x7   :  { %50 = dma.hbm_to_vmem [thread:$0]  %s43_s20, 256, %s45_s22, [#allocation6], %s2583_s26, %s2583_s26, %s2004_s27  }
   0x8   :  { %s2005_s28 = smov [#allocation8]   ;;  %s2006_s30 = smov 16  }
   0x9   :  { %s78_s29 = sshll.u32 %s2005_s28, 4  ;;  %s2007_s1 = smov 1   ;;  %s79_s29 = int_to_ptr.vmem [resolvable:$true] %s78_s29 }
   0xa   :  { %84 = dma.hbm_to_vmem [thread:$0]  %s77_s25, 32, %s79_s29, [#allocation9], %s2006_s30, %s2006_s30, %s2007_s1  }
   0xb   :  { %s29_s18 = sshll.u32 %s2567_s0, 4  ;;  %s2008_s7 = smov [#allocation2]   ;;  %s30_s18 = int_to_ptr.hbm [resolvable:$true] %s29_s18 }
   0xc   :  { %s31_s19 = sshll.u32 %s2008_s7, 4  ;;  %s55_s20 = sshll.u32 %s2569_s2, 4  ;;  %s32_s19 = int_to_ptr.vmem [resolvable:$true] %s31_s19  ;;  %s56_s20 = int_to_ptr.hbm [resolvable:$true] %s55_s20 }
   0xd   :  { %37 = dma.hbm_to_vmem [thread:$0]  %s30_s18, 256, %s32_s19, [#allocation3], %s2583_s26, %s2583_s26, %s2004_s27  }
   0xe   :  { %s2009_s22 = smov [#allocation7]   ;;  %s89_s29 = sshll.u32 %s2575_s8, 4  ;;  %s90_s29 = int_to_ptr.hbm [resolvable:$true] %s89_s29 }
   0xf   :  { %s57_s24 = sshll.u32 %s2009_s22, 4  ;;  %s112_s2 = sshll.u32 %s2581_s14, 4  ;;  %s58_s24 = int_to_ptr.vmem [resolvable:$true] %s57_s24  ;;  %s113_s2 = int_to_ptr.hbm [resolvable:$true] %s112_s2 }
  0x10   :  { %63 = dma.hbm_to_vmem [thread:$0]  %s56_s20, 256, %s58_s24, [#allocation6], %s2583_s26, %s2583_s26, %s2004_s27  }
  0x11   :  { %s2010_s17 = smov [#allocation10]   ;;  %s2011_s18 = smov [#allocation11]  }
  0x12   :  { %s91_s7 = sshll.u32 %s2010_s17, 4  ;;  %s114_s19 = sshll.u32 %s2011_s18, 4  ;;  %s92_s7 = int_to_ptr.vmem [resolvable:$true] %s91_s7  ;;  %s115_s19 = int_to_ptr.vmem [resolvable:$true] %s114_s19 }
  0x13   :  { %97 = dma.hbm_to_vmem [thread:$0]  %s90_s29, 32, %s92_s7, [#allocation9], %s2006_s30, %s2006_s30, %s2007_s1  }
  0x14   :  { %120 = dma.hbm_to_vmem [thread:$0]  %s113_s2, 32, %s115_s19, [#allocation12], %s2006_s30, %s2006_s30, %s2007_s1  }
  0x15   :  { %1992 = dma.done.wait [#allocation3], 256  }
  0x16   :  { %1993 = vsyncadd [#allocation3], 4294967040 }
  0x17   :  { %1994 = dma.done.wait [#allocation6], 512  }
  0x18   :  { %1995 = vsyncadd [#allocation6], 4294966784 }
  0x19   :  { %1996 = dma.done.wait [#allocation9], 64  }
  0x1a   :  { %1997 = vsyncadd [#allocation9], 4294967232 }
  0x1b   :  { %1998 = dma.done.wait [#allocation12], 32  }
  0x1c   :  { %1999 = vsyncadd [#allocation12], 4294967264  ;;  %v156_v0 = vld [vmem:[%s2570_s3 + $0x18] sm:$0xff]  ;;  %v155_v1 = vld [vmem:[%s2570_s3 + $0x10] sm:$0xff]  ;;  %vm161_vm0 = vcmask 261120   ;;  %s2012_s29 = smov 120  }
  0x1d   :  { %180 = vmatpush.msra.mxu0 %v156_v0  ;;  %v145_v2 = vld [vmem:[#allocation2] sm:$0xff]  ;;  %v147_v3 = vld [vmem:[#allocation5] sm:$0xff]  ;;  %v154_v4 = vld [vmem:[%s2570_s3 + $0x8] sm:$0xff]  ;;  %s2013_s0 = smov 88   ;;  %s2014_s16 = smov 96   ;;  %vm199_vm1 = vcmask 64512  }
  0x1e   :  { %v153_v5 = vld [vmem:[%s2570_s3] sm:$0xff]  ;;  %v2151_v6 = vadd.f32 %v147_v3, %v145_v2  ;;  %v146_v7 = vld [vmem:[#allocation2 + $0x8] sm:$0xff]  ;;  %v148_v8 = vld [vmem:[#allocation5 + $0x8] sm:$0xff]  ;;  %s2015_s2 = smov 104   ;;  %s2016_s17 = smov 72   ;;  %vm233_vm2 = vcmask 130048  }
  0x1f   :  { %181 = vmatpush.msra.mxu0 %v155_v1  ;;  %v2155_v9 = vadd.f32 %v148_v8, %v146_v7  ;;  %v1726_v10 = vld [vmem:[%s2571_s4] ss:$0 sm:$0xff]  ;;  %s2017_s7 = smov 80   ;;  %s2018_s18 = smov 112   ;;  %v2202_v44 = vld [vmem:[#allocation7 + $0x8] sm:$0xff]  ;;  %vm607_vm3 = vcmask 195584  }
  0x20   :  { %v2194_v32 = vld [vmem:[#allocation7] sm:$0xff]  ;;  %s2019_s19 = smov 64   ;;  %s2020_s8 = smov 40   ;;  %vm763_vm11 = vcmask 523264  }
  0x21   :  { %182 = vmatpush.msra.mxu0 %v154_v4  ;;  %s2021_s14 = smov 56   ;;  %s2022_s21 = smov 48  }
  0x22   :  { %s2584_s23 = smov 24   ;;  %s1557_s1 = sshll.u32 %s2582_s15, 4  ;;  %s1558_s1 = int_to_ptr.hbm [resolvable:$true] %s1557_s1 }
  0x23   :  { %183 = vmatpush.msra.mxu0 %v153_v5  ;;  %s2587_s20 = smov 128  }
  0x24   :  { %1573 = vmatmul.msk.f32.vlgmr.msra.gmra.mxu0 %vm161_vm0, %v2151_v6 }
  0x2c   :  { %1574 = vmatmul.msk.f32.gmra.mxu0 %vm161_vm0, %v2155_v9 }
  0xa1   :  { %v185_v11 = vpop.f32.mrf.mxu0 }
  0xa2   :  { %v186_v12 = vadd.f32 %v1726_v10, %v185_v11 }
  0xa4   :  { %v191_v13 = vmul.f32 0.35355338, %v186_v12 }
  0xa6   :  { %291 = vrot.lane.b32.xlu2 %v191_v13, %s2012_s29 }
  0xa9   :  { %v188_v14 = vpop.f32.mrf.mxu0 }
  0xaa   :  { %v189_v15 = vadd.f32 %v1726_v10, %v188_v14 }
  0xac   :  { %297 = vrot.lane.b32.xlu1 %v189_v15, %s2013_s0  ;;  %197 = vrot.lane.b32.xlu0 %v189_v15, %s2014_s16  ;;  %v192_v16 = vmul.f32 0.35355338, %v189_v15  ;;  %v2165_v17 = vpack.i.bf16 %v186_v12, %v189_v15 }
  0xae   :  { %293 = vrot.lane.b32.xlu2 %v192_v16, %s2012_s29 }
  0xb4   :  { %295 = vrot.lane.b32.xlu1 %v186_v12, %s2013_s0  ;;  %195 = vrot.lane.b32.xlu0 %v186_v12, %s2014_s16 }
  0xb6   :  { %483 = vrot.lane.b32.xlu2 %v191_v13, %s2015_s2 }
  0xbc   :  { %487 = vrot.lane.b32.xlu1 %v186_v12, %s2016_s17  ;;  %489 = vrot.lane.b32.xlu0 %v189_v15, %s2016_s17 }
  0xbe   :  { %485 = vrot.lane.b32.xlu2 %v192_v16, %s2015_s2 }
  0xc4   :  { %391 = vrot.lane.b32.xlu1 %v186_v12, %s2017_s7  ;;  %393 = vrot.lane.b32.xlu0 %v189_v15, %s2017_s7 }
  0xcc   :  { %389 = vrot.lane.b32.xlu1 %v192_v16, %s2018_s18  ;;  %387 = vrot.lane.b32.xlu0 %v191_v13, %s2018_s18 }
 0x100   :  { %v292_v20 = vpop.permute.xlu2 %291 }
 0x108   :  { %v294_v23 = vpop.permute.xlu2 %293 }
 0x110   :  { %v484_v27 = vpop.permute.xlu2 %483 }
 0x118   :  { %v486_v30 = vpop.permute.xlu2 %485 }
 0x11e   :  { %v298_v18 = vpop.permute.xlu1 %297  ;;  %v198_v19 = vpop.permute.xlu0 %197 }
 0x11f   :  { %1575 = vmatpush.xpose.msk.msra.mxu1 %vm199_vm1, %v198_v19  ;;  %1581 = vmatpush.xpose.msk.msra.mxu3 %vm199_vm1, %v298_v18 }
 0x126   :  { %v296_v21 = vpop.permute.xlu1 %295  ;;  %v196_v22 = vpop.permute.xlu0 %195 }
 0x127   :  { %1576 = vmatpush.xpose.msk.msra.mxu1 %vm199_vm1, %v196_v22  ;;  %1582 = vmatpush.xpose.msk.msra.mxu3 %vm199_vm1, %v296_v21 }
 0x12a   :  { %1577 = vmatmul.msk.f32.vlgmr.msra.gmra.mxu1 %vm199_vm1, %v191_v13  ;;  %1583 = vmatmul.msk.f32.vlgmr.msra.gmra.mxu3 %vm199_vm1, %v292_v20 }
 0x12e   :  { %v490_v24 = vpop.permute.xlu0 %489  ;;  %v488_v25 = vpop.permute.xlu1 %487 }
 0x12f   :  { %1593 = vmatpush.xpose.msk.msrb.mxu3 %vm199_vm1, %v490_v24 }
 0x132   :  { %1578 = vmatmul.msk.f32.gmra.mxu1 %vm199_vm1, %v192_v16  ;;  %1584 = vmatmul.msk.f32.gmra.mxu3 %vm199_vm1, %v294_v23 }
 0x133   :  { %1594 = vmatpush.xpose.msk.msrb.mxu3 %vm199_vm1, %v488_v25 }
 0x136   :  { %v394_v26 = vpop.permute.xlu0 %393  ;;  %v392_v28 = vpop.permute.xlu1 %391 }
 0x137   :  { %1587 = vmatpush.xpose.msk.msrb.mxu0 %vm199_vm1, %v394_v26 }
 0x13a   :  { %1595 = vmatmul.msk.f32.vlgmr.msrb.gmra.mxu3 %vm199_vm1, %v484_v27 }
 0x13b   :  { %1588 = vmatpush.xpose.msk.msrb.mxu0 %vm199_vm1, %v392_v28 }
 0x13e   :  { %v388_v29 = vpop.permute.xlu0 %387  ;;  %v390_v31 = vpop.permute.xlu1 %389 }
 0x13f   :  { %1589 = vmatmul.msk.f32.vlgmr.msrb.gmra.mxu0 %vm199_vm1, %v388_v29 }
 0x142   :  { %1596 = vmatmul.msk.f32.gmra.mxu3 %vm199_vm1, %v486_v30 }
 0x147   :  { %1590 = vmatmul.msk.f32.gmra.mxu0 %vm199_vm1, %v390_v31 }
 0x1a7   :  { %v227_v33 = vpop.f32.mrf.mxu1 }
 0x1a8   :  { %v228_v34 = vadd.f32 %v227_v33, %v2194_v32 }
 0x1aa   :  { %v234_v35 = vsel %vm233_vm2, %v228_v34, -inf }
 0x1ab   :  { %235 = vmax.xlane.f32.xlu2 %v234_v35 }
 0x1ad   :  { %v324_v36 = vpop.f32.mrf.mxu3 }
 0x1ae   :  { %v325_v37 = vadd.f32 %v324_v36, %v2194_v32 }
 0x1af   :  { %v230_v45 = vpop.f32.mrf.mxu1 }
 0x1b0   :  { %v330_v38 = vsel %vm233_vm2, %v325_v37, -inf  ;;  %v231_v46 = vadd.f32 %v230_v45, %v2202_v44 }
 0x1b1   :  { %331 = vmax.xlane.f32.xlu1 %v330_v38 }
 0x1b2   :  { %v237_v51 = vsel %vm233_vm2, %v231_v46, -inf }
 0x1b5   :  { %v327_v39 = vpop.f32.mrf.mxu3 }
 0x1b6   :  { %v328_v54 = vadd.f32 %v327_v39, %v2202_v44 }
 0x1b8   :  { %v333_v55 = vsel %vm233_vm2, %v328_v54, -inf }
 0x1bc   :  { %v420_v40 = vpop.f32.mrf.mxu0 }
 0x1bd   :  { %v421_v41 = vadd.f32 %v420_v40, %v2194_v32  ;;  %v516_v42 = vpop.f32.mrf.mxu3 }
 0x1be   :  { %v517_v56 = vadd.f32 %v516_v42, %v2194_v32 }
 0x1bf   :  { %v426_v43 = vsel %vm233_vm2, %v421_v41, -inf }
 0x1c0   :  { %427 = vmax.xlane.f32.xlu0 %v426_v43  ;;  %v522_v57 = vsel %vm233_vm2, %v517_v56, -inf }
 0x1c4   :  { %v423_v47 = vpop.f32.mrf.mxu0 }
 0x1c5   :  { %v2206_v48 = vadd.f32 %v423_v47, %v2202_v44  ;;  %v519_v49 = vpop.f32.mrf.mxu3 }
 0x1c6   :  { %v2209_v50 = vadd.f32 %v519_v49, %v2202_v44 }
 0x1c7   :  { %v429_v52 = vsel %vm233_vm2, %v2206_v48, -inf }
 0x1c8   :  { %238 = vmax.xlane.f32.xlu0 %v237_v51  ;;  %430 = vmax.xlane.f32.xlu2 %v429_v52  ;;  %v525_v53 = vsel %vm233_vm2, %v2209_v50, -inf }
 0x1c9   :  { %526 = vmax.xlane.f32.xlu1 %v525_v53 }
 0x1d0   :  { %334 = vmax.xlane.f32.xlu2 %v333_v55 }
 0x1d8   :  { %523 = vmax.xlane.f32.xlu2 %v522_v57 }
 0x1e2   :  { %1687 = vrot.lane.b32.xlu1 %v2165_v17, %s2019_s19 }
 0x21e   :  { %v236_v58 = vpop.xlane.xlu2 %235 }
 0x21f   :  { %v240_v59 = vsub.f32 %v228_v34, %v236_v58 }
 0x221   :  { %v242_v60 = vmul.f32 1.442695, %v240_v59 }
 0x223   :  { %1742 = vpow2.f32 %v242_v60 }
 0x224   :  { %v332_v61 = vpop.xlane.xlu1 %331 }
 0x225   :  { %v336_v62 = vsub.f32 %v325_v37, %v332_v61 }
 0x227   :  { %v338_v63 = vmul.f32 1.442695, %v336_v62 }
 0x229   :  { %v1743_v0 = vpop.eup %1742  ;;  %1744 = vpow2.f32 %v338_v63 }
 0x22a   :  { %v246_v1 = vsel %vm233_vm2, %v1743_v0, 0.0 }
 0x22b   :  { %247 = vadd.xlane.f32.xlu0 %v246_v1 }
 0x22f   :  { %v2223_v2 = vpop.eup %1744 }
 0x230   :  { %v342_v3 = vsel %vm233_vm2, %v2223_v2, 0.0 }
 0x233   :  { %v428_v4 = vpop.xlane.xlu0 %427  ;;  %343 = vadd.xlane.f32.xlu0 %v342_v3 }
 0x234   :  { %v432_v5 = vsub.f32 %v421_v41, %v428_v4 }
 0x236   :  { %v434_v7 = vmul.f32 1.442695, %v432_v5 }
 0x238   :  { %1746 = vpow2.f32 %v434_v7 }
 0x23b   :  { %v239_v8 = vpop.xlane.xlu0 %238  ;;  %v431_v18 = vpop.xlane.xlu2 %430 }
 0x23c   :  { %v241_v10 = vsub.f32 %v231_v46, %v239_v8  ;;  %v527_v16 = vpop.xlane.xlu1 %526  ;;  %v433_v39 = vsub.f32 %v2206_v48, %v431_v18 }
 0x23d   :  { %v529_v31 = vsub.f32 %v2209_v50, %v527_v16 }
 0x23e   :  { %v2227_v11 = vpop.eup %1746  ;;  %v244_v12 = vmul.f32 1.442695, %v241_v10  ;;  %v436_v41 = vmul.f32 1.442695, %v433_v39 }
 0x23f   :  { %v438_v13 = vsel %vm233_vm2, %v2227_v11, 0.0  ;;  %v532_v34 = vmul.f32 1.442695, %v529_v31 }
 0x240   :  { %1748 = vpow2.f32 %v244_v12  ;;  %439 = vadd.xlane.f32.xlu1 %v438_v13 }
 0x243   :  { %v335_v22 = vpop.xlane.xlu2 %334 }
 0x244   :  { %v337_v23 = vsub.f32 %v328_v54, %v335_v22  ;;  %v612_v22 = vld [vmem:[%s2572_s5 + $0x10] sm:$0xff] }
 0x246   :  { %v1749_v14 = vpop.eup %1748  ;;  %v340_v24 = vmul.f32 1.442695, %v337_v23  ;;  %v611_v23 = vld [vmem:[%s2572_s5 + $0x8] sm:$0xff] }
 0x247   :  { %1697 = vrot.lane.b32.xlu0 %v2165_v17, %s2020_s8  ;;  %v249_v15 = vsel %vm233_vm2, %v1749_v14, 0.0 }
 0x248   :  { %250 = vadd.xlane.f32.xlu2 %v249_v15  ;;  %1750 = vpow2.f32 %v340_v24  ;;  %v610_v24 = vld [vmem:[%s2572_s5] sm:$0xff] }
 0x24b   :  { %v524_v25 = vpop.xlane.xlu2 %523 }
 0x24c   :  { %v528_v26 = vsub.f32 %v517_v56, %v524_v25 }
 0x24e   :  { %v530_v27 = vmul.f32 1.442695, %v528_v26  ;;  %v1751_v28 = vpop.eup %1750 }
 0x24f   :  { %v345_v29 = vsel %vm233_vm2, %v1751_v28, 0.0 }
 0x250   :  { %1752 = vpow2.f32 %v530_v27 }
 0x251   :  { %1754 = vpow2.f32 %v532_v34 }
 0x254   :  { %v1688_v19 = vpop.permute.xlu1 %1687 }
 0x255   :  { %v1689_v20 = vunpack.i.l.bf16 %v1688_v19  ;;  %v1690_v21 = vunpack.i.h.bf16 %v1688_v19 }
 0x256   :  { %v1753_v30 = vpop.eup %1752 }
 0x257   :  { %282 = vmatpush.msra.mxu2 %v1689_v20  ;;  %v534_v33 = vsel %vm233_vm2, %v1753_v30, 0.0  ;;  %v1755_v35 = vpop.eup %1754 }
 0x258   :  { %v537_v36 = vsel %vm233_vm2, %v1755_v35, 0.0 }
 0x259   :  { %283 = vmatpush.msra.mxu2 %v1690_v21  ;;  %v613_v21 = vld [vmem:[%s2572_s5 + $0x18] sm:$0xff] }
 0x25a   :  { %636 = vmatpush.msra.mxu0 %v613_v21  ;;  %v757_v21 = vld [vmem:[%s2578_s11 + $0x30] sm:$0xff] }
 0x25c   :  { %637 = vmatpush.msra.mxu0 %v612_v22  ;;  %v756_v22 = vld [vmem:[%s2578_s11 + $0x28] sm:$0xff] }
 0x25e   :  { %638 = vmatpush.msra.mxu0 %v611_v23 }
 0x260   :  { %1692 = vrot.lane.b32.xlu2 %v2165_v17, %s2021_s14  ;;  %639 = vmatpush.msra.mxu0 %v610_v24 }
 0x271   :  { %346 = vadd.xlane.f32.xlu0 %v345_v29 }
 0x279   :  { %535 = vadd.xlane.f32.xlu0 %v534_v33 }
 0x289   :  { %538 = vadd.xlane.f32.xlu2 %v537_v36 }
 0x28d   :  { %1702 = vrot.lane.b32.xlu0 %v2165_v17, %s2022_s21 }
 0x29e   :  { %v248_v37 = vpop.xlane.xlu0 %247 }
 0x29f   :  { %1756 = vrcp.f32 %v248_v37 }
 0x2a0   :  { %1758 = vpow2.f32 %v436_v41 }
 0x2a5   :  { %v1757_v38 = vpop.eup %1756 }
 0x2a6   :  { %v254_v40 = vmul.f32 %v1757_v38, %v1743_v0  ;;  %v1759_v42 = vpop.eup %1758  ;;  %v344_v46 = vpop.xlane.xlu0 %343  ;;  %v1727_v38 = vld [vmem:[%s2573_s6] ss:$0 sm:$0xff] }
 0x2a7   :  { %v441_v43 = vsel %vm233_vm2, %v1759_v42, 0.0 }
 0x2a8   :  { %1579 = vmatmul.msk.f32.vlgmr.msra.gmra.mxu2 %vm233_vm2, %v254_v40 }
 0x2b3   :  { %v440_v62 = vpop.xlane.xlu1 %439 }
 0x2b7   :  { %442 = vadd.xlane.f32.xlu0 %v441_v43 }
 0x2b9   :  { %v1698_v50 = vpop.permute.xlu0 %1697 }
 0x2ba   :  { %v1699_v52 = vunpack.i.l.bf16 %v1698_v50  ;;  %v1700_v54 = vunpack.i.h.bf16 %v1698_v50 }
 0x2bb   :  { %v251_v45 = vpop.xlane.xlu2 %250 }
 0x2bc   :  { %1760 = vrcp.f32 %v251_v45 }
 0x2bd   :  { %1762 = vrcp.f32 %v344_v46 }
 0x2c2   :  { %v1761_v47 = vpop.eup %1760 }
 0x2c3   :  { %v1693_v17 = vpop.permute.xlu2 %1692  ;;  %v255_v49 = vmul.f32 %v1761_v47, %v1749_v14  ;;  %v1763_v53 = vpop.eup %1762 }
 0x2c4   :  { %v1694_v51 = vunpack.i.l.bf16 %v1693_v17  ;;  %v1695_v48 = vunpack.i.h.bf16 %v1693_v17  ;;  %v350_v55 = vmul.f32 %v1763_v53, %v2223_v2  ;;  %v2024_v17 = vmov 32.0  }
 0x2c5   :  { %1580 = vmatmul.msk.f32.gmra.mxu2 %vm233_vm2, %v255_v49 }
 0x2c6   :  { %378 = vmatpush.msrb.mxu2 %v1694_v51 }
 0x2c8   :  { %379 = vmatpush.msrb.mxu2 %v1695_v48 }
 0x2ca   :  { %570 = vmatpush.msra.mxu2 %v1699_v52 }
 0x2cc   :  { %571 = vmatpush.msra.mxu2 %v1700_v54 }
 0x2cd   :  { %1585 = vmatmul.msk.f32.vlgmr.msrb.gmra.mxu2 %vm233_vm2, %v350_v55 }
 0x2e4   :  { %v347_v56 = vpop.xlane.xlu0 %346 }
 0x2e5   :  { %1764 = vrcp.f32 %v347_v56 }
 0x2eb   :  { %v1765_v57 = vpop.eup %1764 }
 0x2ec   :  { %v536_v58 = vpop.xlane.xlu0 %535  ;;  %v351_v59 = vmul.f32 %v1765_v57, %v1751_v28 }
 0x2ed   :  { %1766 = vrcp.f32 %v536_v58 }
 0x2ee   :  { %1586 = vmatmul.msk.f32.gmra.mxu2 %vm233_vm2, %v351_v59  ;;  %1768 = vrcp.f32 %v440_v62  ;;  %v715_v62 = vld [vmem:[%s2576_s9 + $0x18] sm:$0xff] }
 0x2f3   :  { %v1767_v60 = vpop.eup %1766 }
 0x2f4   :  { %v542_v61 = vmul.f32 %v1767_v60, %v1753_v30  ;;  %v1769_v1 = vpop.eup %1768 }
 0x2f5   :  { %v446_v5 = vmul.f32 %v1769_v1, %v2227_v11  ;;  %v712_v1 = vld [vmem:[%s2576_s9] sm:$0xff] }
 0x2f6   :  { %1597 = vmatmul.msk.f32.vlgmr.msra.gmra.mxu2 %vm233_vm2, %v542_v61 }
 0x2fc   :  { %v539_v63 = vpop.xlane.xlu2 %538 }
 0x2fd   :  { %1770 = vrcp.f32 %v539_v63  ;;  %v714_v63 = vld [vmem:[%s2576_s9 + $0x10] sm:$0xff] }
 0x2ff   :  { %v1703_v0 = vpop.permute.xlu0 %1702 }
 0x300   :  { %v1704_v2 = vunpack.i.l.bf16 %v1703_v0  ;;  %v1705_v3 = vunpack.i.h.bf16 %v1703_v0  ;;  %v713_v0 = vld [vmem:[%s2576_s9 + $0x8] sm:$0xff] }
 0x302   :  { %474 = vmatpush.msrb.mxu1 %v1704_v2 }
 0x303   :  { %v1771_v4 = vpop.eup %1770 }
 0x304   :  { %475 = vmatpush.msrb.mxu1 %v1705_v3  ;;  %v543_v7 = vmul.f32 %v1771_v4, %v1755_v35 }
 0x305   :  { %1591 = vmatmul.msk.f32.vlgmr.msrb.gmra.mxu1 %vm233_vm2, %v446_v5 }
 0x306   :  { %1598 = vmatmul.msk.f32.gmra.mxu2 %vm233_vm2, %v543_v7  ;;  %738 = vmatpush.msra.mxu1 %v715_v62 }
 0x308   :  { %739 = vmatpush.msra.mxu1 %v714_v63 }
 0x30a   :  { %740 = vmatpush.msra.mxu1 %v713_v0 }
 0x30c   :  { %741 = vmatpush.msra.mxu1 %v712_v1 }
 0x32a   :  { %v443_v8 = vpop.xlane.xlu0 %442 }
 0x32b   :  { %1772 = vrcp.f32 %v443_v8  ;;  %v285_v13 = vpop.f32.mrf.mxu2 }
 0x32c   :  { %1774 = vrcp.f32 %v2024_v17 }
 0x331   :  { %v1773_v10 = vpop.eup %1772 }
 0x332   :  { %v447_v12 = vmul.f32 %v1773_v10, %v1759_v42  ;;  %v1775_v49 = vpop.eup %1774 }
 0x333   :  { %v658_v50 = vmul.f32 32.0, %v1775_v49  ;;  %vm662_vm4 = vweird.f32 %v1775_v49 }
 0x334   :  { %1592 = vmatmul.msk.f32.gmra.mxu1 %vm233_vm2, %v447_v12 }
 0x335   :  { %v659_v51 = vsub.f32 1.0, %v658_v50  ;;  %v1731_v50 = vld [vmem:[%s2579_s12] ss:$0 sm:$0xff] }
 0x337   :  { %v660_v48 = vmul.f32 %v1775_v49, %v659_v51 }
 0x339   :  { %v661_v52 = vadd.f32 %v1775_v49, %v660_v48 }
 0x33b   :  { %v2287_v53 = vsel %vm662_vm4, %v1775_v49, %v661_v52 }
 0x348   :  { %v288_v14 = vpop.f32.mrf.mxu2 }
 0x350   :  { %v381_v15 = vpop.f32.mrf.mxu2 }
 0x351   :  { %581 = vrot.lane.b32.xlu1 %v381_v15, %s2004_s27 }
 0x371   :  { %v384_v16 = vpop.f32.mrf.mxu2 }
 0x379   :  { %v573_v18 = vpop.f32.mrf.mxu2 }
 0x37a   :  { %597 = vrot.lane.b32.xlu1 %v573_v18, %s2584_s23  ;;  %v1729_v18 = vld [vmem:[#allocation10] ss:$0 sm:$0xff] }
 0x382   :  { %v477_v11 = vpop.f32.mrf.mxu1  ;;  %583 = vrot.lane.b32.xlu1 %v384_v16, %s2004_s27 }
 0x383   :  { %589 = vrot.lane.b32.xlu2 %v477_v11, %s2006_s30 }
 0x389   :  { %v576_v19 = vpop.f32.mrf.mxu2 }
 0x38b   :  { %599 = vrot.lane.b32.xlu2 %v576_v19, %s2584_s23 }
 0x3b1   :  { %v480_v20 = vpop.f32.mrf.mxu1 }
 0x3b2   :  { %591 = vrot.lane.b32.xlu0 %v480_v20, %s2006_s30  ;;  %v758_v20 = vld [vmem:[%s2578_s11 + $0x38] sm:$0xff] }
 0x3b3   :  { %778 = vmatpush.msra.mxu3 %v758_v20 }
 0x3b5   :  { %779 = vmatpush.msra.mxu3 %v757_v21 }
 0x3b7   :  { %780 = vmatpush.msra.mxu3 %v756_v22  ;;  %v1733_v22 = vld [vmem:[#allocation11] ss:$0 sm:$0xff] }
 0x3c3   :  { %v582_v25 = vpop.permute.xlu1 %581 }
 0x3c4   :  { %v603_v27 = vsel %vm199_vm1, %v285_v13, %v582_v25  ;;  %v755_v25 = vld [vmem:[%s2578_s11 + $0x20] sm:$0xff] }
 0x3c5   :  { %781 = vmatpush.msra.mxu3 %v755_v25 }
 0x3dd   :  { %v590_v26 = vpop.permute.xlu2 %589 }
 0x3de   :  { %v605_v28 = vsel %vm233_vm2, %v603_v27, %v590_v26  ;;  %v754_v27 = vld [vmem:[%s2578_s11 + $0x18] sm:$0xff] }
 0x3df   :  { %782 = vmatpush.msra.mxu3 %v754_v27 }
 0x3e5   :  { %v600_v35 = vpop.permute.xlu2 %599 }
 0x3ec   :  { %v598_v29 = vpop.permute.xlu1 %597 }
 0x3ed   :  { %v608_v30 = vsel %vm607_vm3, %v605_v28, %v598_v29 }
 0x3ee   :  { %1599 = vmatmul.msk.f32.vlgmr.msra.gmra.mxu0 %vm161_vm0, %v608_v30 }
 0x3f4   :  { %v584_v31 = vpop.permute.xlu1 %583 }
 0x3f5   :  { %v604_v33 = vsel %vm199_vm1, %v288_v14, %v584_v31  ;;  %v1728_v14 = vld [vmem:[#allocation8] ss:$0 sm:$0xff] }
 0x424   :  { %v592_v34 = vpop.permute.xlu0 %591 }
 0x425   :  { %v606_v36 = vsel %vm233_vm2, %v604_v33, %v592_v34 }
 0x426   :  { %v609_v37 = vsel %vm607_vm3, %v606_v36, %v600_v35 }
 0x427   :  { %1600 = vmatmul.msk.f32.gmra.mxu0 %vm161_vm0, %v609_v37 }
 0x46b   :  { %v641_v39 = vpop.f32.mrf.mxu0 }
 0x46c   :  { %v642_v40 = vadd.f32 %v1727_v38, %v641_v39  ;;  %v753_v39 = vld [vmem:[%s2578_s11 + $0x10] sm:$0xff] }
 0x46d   :  { %783 = vmatpush.msra.mxu3 %v753_v39  ;;  %v1734_v39 = vld [vmem:[%s2571_s4 + $0x1] ss:$0 sm:$0xff]  ;;  %s2586_s4 = smov 24  }
 0x46e   :  { %v647_v41 = vadd.f32 %v642_v40, %v2151_v6  ;;  %v752_v40 = vld [vmem:[%s2578_s11 + $0x8] sm:$0xff] }
 0x46f   :  { %784 = vmatpush.msra.mxu3 %v752_v40 }
 0x470   :  { %v651_v42 = vsel %vm161_vm0, %v647_v41, 0.0 }
 0x471   :  { %652 = vadd.xlane.f32.xlu1 %v651_v42  ;;  %v1730_v42 = vld [vmem:[%s2577_s10] ss:$0 sm:$0xff] }
 0x4a4   :  { %v644_v43 = vpop.f32.mrf.mxu0 }
 0x4a5   :  { %v645_v45 = vadd.f32 %v1727_v38, %v644_v43 }
 0x4a7   :  { %v648_v46 = vadd.f32 %v645_v45, %v2155_v9 }
 0x4a9   :  { %v654_v47 = vsel %vm161_vm0, %v648_v46, 0.0 }
 0x4aa   :  { %655 = vadd.xlane.f32.xlu2 %v654_v47 }
 0x4e4   :  { %v653_v6 = vpop.xlane.xlu1 %652 }
 0x4e5   :  { %v664_v54 = vmul.f32 %v2287_v53, %v653_v6 }
 0x4e7   :  { %v666_v55 = vsub.f32 %v647_v41, %v664_v54  ;;  %v751_v41 = vld [vmem:[%s2578_s11] sm:$0xff] }
 0x4e8   :  { %785 = vmatpush.msra.mxu3 %v751_v41 }
 0x4e9   :  { %v668_v56 = vmul.f32 %v666_v55, %v666_v55 }
 0x4eb   :  { %v670_v9 = vsel %vm161_vm0, %v668_v56, 0.0 }
 0x4ec   :  { %671 = vadd.xlane.f32.xlu0 %v670_v9 }
 0x51d   :  { %v656_v57 = vpop.xlane.xlu2 %655 }
 0x51e   :  { %v665_v58 = vmul.f32 %v2287_v53, %v656_v57 }
 0x520   :  { %v667_v59 = vsub.f32 %v648_v46, %v665_v58 }
 0x522   :  { %v669_v60 = vmul.f32 %v667_v59, %v667_v59 }
 0x524   :  { %v673_v61 = vsel %vm161_vm0, %v669_v60, 0.0 }
 0x525   :  { %674 = vadd.xlane.f32.xlu1 %v673_v61 }
 0x55f   :  { %v672_v2 = vpop.xlane.xlu0 %671 }
 0x560   :  { %v676_v3 = vmul.f32 %v672_v2, %v2287_v53 }
 0x562   :  { %v678_v4 = vadd.f32 1e-05, %v676_v3  ;;  %v1608_v3 = vld [vmem:[%s2570_s3 + $0x38] sm:$0xff] }
 0x563   :  { %879 = vmatpush.msrb.mxu2 %v1608_v3 }
 0x564   :  { %1776 = vrsqrt.f32 %v678_v4  ;;  %vm686_vm6 = vweird.f32 %v678_v4 }
 0x56a   :  { %v1777_v5 = vpop.eup %1776 }
 0x56b   :  { %v681_v7 = vmul.f32 %v1777_v5, %v678_v4  ;;  %vm687_vm5 = vweird.f32 %v1777_v5  ;;  %v1607_v4 = vld [vmem:[%s2570_s3 + $0x30] sm:$0xff] }
 0x56c   :  { %vm688_vm7 = vmor %vm686_vm6, %vm687_vm5  ;;  %880 = vmatpush.msrb.mxu2 %v1607_v4 }
 0x56d   :  { %v682_v8 = vmul.f32 %v1777_v5, %v681_v7  ;;  %v1605_v7 = vld [vmem:[%s2570_s3 + $0x20] sm:$0xff] }
 0x56f   :  { %v683_v10 = vmul.f32 0.5, %v682_v8 }
 0x571   :  { %v684_v12 = vsub.f32 1.5, %v683_v10 }
 0x573   :  { %v685_v13 = vmul.f32 %v1777_v5, %v684_v12 }
 0x575   :  { %v689_v15 = vsel %vm688_vm7, %v1777_v5, %v685_v13  ;;  %v1606_v5 = vld [vmem:[%s2570_s3 + $0x28] sm:$0xff] }
 0x576   :  { %v700_v16 = vmul.f32 %v689_v15, %v666_v55  ;;  %881 = vmatpush.msrb.mxu2 %v1606_v5 }
 0x578   :  { %v705_v11 = vmul.f32 %v1728_v14, %v700_v16  ;;  %882 = vmatpush.msrb.mxu2 %v1605_v7 }
 0x57a   :  { %v710_v19 = vadd.f32 %v1729_v18, %v705_v11 }
 0x57c   :  { %1601 = vmatmul.msk.f32.vlgmr.msra.gmra.mxu1 %vm161_vm0, %v710_v19 }
 0x598   :  { %v675_v23 = vpop.xlane.xlu1 %674 }
 0x599   :  { %v677_v24 = vmul.f32 %v675_v23, %v2287_v53 }
 0x59b   :  { %v679_v26 = vadd.f32 1e-05, %v677_v24 }
 0x59d   :  { %1778 = vrsqrt.f32 %v679_v26  ;;  %vm696_vm9 = vweird.f32 %v679_v26 }
 0x5a3   :  { %v1779_v28 = vpop.eup %1778 }
 0x5a4   :  { %v691_v29 = vmul.f32 %v1779_v28, %v679_v26  ;;  %vm697_vm8 = vweird.f32 %v1779_v28 }
 0x5a5   :  { %vm698_vm10 = vmor %vm696_vm9, %vm697_vm8 }
 0x5a6   :  { %v692_v30 = vmul.f32 %v1779_v28, %v691_v29 }
 0x5a8   :  { %v693_v31 = vmul.f32 0.5, %v692_v30 }
 0x5aa   :  { %v694_v33 = vsub.f32 1.5, %v693_v31 }
 0x5ac   :  { %v695_v34 = vmul.f32 %v1779_v28, %v694_v33 }
 0x5ae   :  { %v699_v35 = vsel %vm698_vm10, %v1779_v28, %v695_v34 }
 0x5af   :  { %v701_v36 = vmul.f32 %v699_v35, %v667_v59 }
 0x5b1   :  { %v706_v37 = vmul.f32 %v1728_v14, %v701_v36 }
 0x5b3   :  { %v711_v38 = vadd.f32 %v1729_v18, %v706_v37 }
 0x5b5   :  { %1602 = vmatmul.msk.f32.gmra.mxu1 %vm161_vm0, %v711_v38 }
 0x5f9   :  { %v743_v43 = vpop.f32.mrf.mxu1 }
 0x5fa   :  { %v744_v45 = vadd.f32 %v1730_v42, %v743_v43 }
 0x5fc   :  { %v749_v46 = vmax.f32 %v744_v45, 0.0 }
 0x5fe   :  { %1603 = vmatmul.msk.f32.vlgmr.msra.gmra.mxu3 %vm763_vm11, %v749_v46 }
 0x632   :  { %v746_v47 = vpop.f32.mrf.mxu1 }
 0x633   :  { %v747_v17 = vadd.f32 %v1730_v42, %v746_v47 }
 0x635   :  { %v750_v49 = vmax.f32 %v747_v17, 0.0 }
 0x637   :  { %1604 = vmatmul.msk.f32.gmra.mxu3 %vm763_vm11, %v750_v49 }
 0x681   :  { %v787_v51 = vpop.f32.mrf.mxu3 }
 0x682   :  { %v788_v48 = vadd.f32 %v1731_v50, %v787_v51 }
 0x684   :  { %v793_v52 = vadd.f32 %v788_v48, %v710_v19  ;;  %v1732_v19 = vld [vmem:[%s2580_s13] ss:$0 sm:$0xff] }
 0x686   :  { %v797_v6 = vsel %vm161_vm0, %v793_v52, 0.0 }
 0x687   :  { %798 = vadd.xlane.f32.xlu2 %v797_v6 }
 0x6ba   :  { %v790_v54 = vpop.f32.mrf.mxu3 }
 0x6bb   :  { %v791_v55 = vadd.f32 %v1731_v50, %v790_v54 }
 0x6bd   :  { %v794_v56 = vadd.f32 %v791_v55, %v711_v38 }
 0x6bf   :  { %v800_v9 = vsel %vm161_vm0, %v794_v56, 0.0 }
 0x6c0   :  { %801 = vadd.xlane.f32.xlu1 %v800_v9 }
 0x6fa   :  { %v799_v57 = vpop.xlane.xlu2 %798 }
 0x6fb   :  { %v803_v58 = vmul.f32 %v799_v57, %v2287_v53 }
 0x6fd   :  { %v805_v59 = vsub.f32 %v793_v52, %v803_v58 }
 0x6ff   :  { %v807_v60 = vmul.f32 %v805_v59, %v805_v59 }
 0x701   :  { %v809_v61 = vsel %vm161_vm0, %v807_v60, 0.0 }
 0x702   :  { %810 = vadd.xlane.f32.xlu2 %v809_v61 }
 0x733   :  { %v802_v62 = vpop.xlane.xlu1 %801 }
 0x734   :  { %v804_v63 = vmul.f32 %v802_v62, %v2287_v53 }
 0x736   :  { %v806_v0 = vsub.f32 %v794_v56, %v804_v63 }
 0x738   :  { %v808_v1 = vmul.f32 %v806_v0, %v806_v0 }
 0x73a   :  { %v812_v2 = vsel %vm161_vm0, %v808_v1, 0.0 }
 0x73b   :  { %813 = vadd.xlane.f32.xlu0 %v812_v2 }
 0x775   :  { %v811_v8 = vpop.xlane.xlu2 %810 }
 0x776   :  { %v815_v10 = vmul.f32 %v811_v8, %v2287_v53 }
 0x778   :  { %v817_v12 = vadd.f32 1e-05, %v815_v10 }
 0x77a   :  { %1780 = vrsqrt.f32 %v817_v12  ;;  %vm825_vm13 = vweird.f32 %v817_v12 }
 0x780   :  { %v1781_v13 = vpop.eup %1780 }
 0x781   :  { %v820_v14 = vmul.f32 %v1781_v13, %v817_v12  ;;  %vm826_vm12 = vweird.f32 %v1781_v13 }
 0x782   :  { %vm827_vm14 = vmor %vm825_vm13, %vm826_vm12 }
 0x783   :  { %v821_v15 = vmul.f32 %v1781_v13, %v820_v14 }
 0x785   :  { %v822_v16 = vmul.f32 0.5, %v821_v15 }
 0x787   :  { %v823_v18 = vsub.f32 1.5, %v822_v16 }
 0x789   :  { %v824_v11 = vmul.f32 %v1781_v13, %v823_v18 }
 0x78b   :  { %v828_v20 = vsel %vm827_vm14, %v1781_v13, %v824_v11 }
 0x78c   :  { %v839_v21 = vmul.f32 %v828_v20, %v805_v59 }
 0x78e   :  { %v844_v23 = vmul.f32 %v1732_v19, %v839_v21 }
 0x790   :  { %v2363_v24 = vadd.f32 %v1733_v22, %v844_v23 }
 0x792   :  { %1610 = vmatmul.msk.f32.vlgmr.msrb.gmra.mxu2 %vm161_vm0, %v2363_v24 }
 0x7ae   :  { %v814_v25 = vpop.xlane.xlu0 %813 }
 0x7af   :  { %v816_v26 = vmul.f32 %v814_v25, %v2287_v53 }
 0x7b1   :  { %v818_v27 = vadd.f32 1e-05, %v816_v26 }
 0x7b3   :  { %1782 = vrsqrt.f32 %v818_v27  ;;  %vm835_vm4 = vweird.f32 %v818_v27 }
 0x7b9   :  { %v1783_v28 = vpop.eup %1782 }
 0x7ba   :  { %v830_v29 = vmul.f32 %v1783_v28, %v818_v27  ;;  %vm836_vm15 = vweird.f32 %v1783_v28 }
 0x7bb   :  { %vm837_vm5 = vmor %vm835_vm4, %vm836_vm15 }
 0x7bc   :  { %v831_v30 = vmul.f32 %v1783_v28, %v830_v29 }
 0x7be   :  { %v832_v31 = vmul.f32 0.5, %v831_v30 }
 0x7c0   :  { %v833_v33 = vsub.f32 1.5, %v832_v31 }
 0x7c2   :  { %v834_v34 = vmul.f32 %v1783_v28, %v833_v33 }
 0x7c4   :  { %v838_v35 = vsel %vm837_vm5, %v1783_v28, %v834_v34 }
 0x7c5   :  { %v840_v36 = vmul.f32 %v838_v35, %v806_v0 }
 0x7c7   :  { %v845_v37 = vmul.f32 %v1732_v19, %v840_v36 }
 0x7c9   :  { %v2368_v38 = vadd.f32 %v1733_v22, %v845_v37 }
 0x7cb   :  { %1611 = vmatmul.msk.f32.gmra.mxu2 %vm161_vm0, %v2368_v38 }
 0x815   :  { %v884_v40 = vpop.f32.mrf.mxu2 }
 0x816   :  { %v885_v41 = vadd.f32 %v1734_v39, %v884_v40 }
 0x818   :  { %992 = vrot.lane.b32.xlu2 %v885_v41, %s2013_s0  ;;  %v890_v42 = vmul.f32 0.35355338, %v885_v41 }
 0x81a   :  { %988 = vrot.lane.b32.xlu0 %v890_v42, %s2012_s29 }
 0x822   :  { %894 = vrot.lane.b32.xlu0 %v885_v41, %s2014_s16 }
 0x82a   :  { %1184 = vrot.lane.b32.xlu0 %v885_v41, %s2016_s17 }
 0x832   :  { %1088 = vrot.lane.b32.xlu0 %v885_v41, %s2017_s7 }
 0x84e   :  { %v887_v43 = vpop.f32.mrf.mxu2 }
 0x84f   :  { %v888_v45 = vadd.f32 %v1734_v39, %v887_v43 }
 0x851   :  { %994 = vrot.lane.b32.xlu1 %v888_v45, %s2013_s0  ;;  %v891_v46 = vmul.f32 0.35355338, %v888_v45  ;;  %v2381_v47 = vpack.i.bf16 %v885_v41, %v888_v45 }
 0x853   :  { %990 = vrot.lane.b32.xlu2 %v891_v46, %s2012_s29  ;;  %1086 = vrot.lane.b32.xlu0 %v891_v46, %s2018_s18 }
 0x859   :  { %896 = vrot.lane.b32.xlu1 %v888_v45, %s2014_s16 }
 0x85b   :  { %1180 = vrot.lane.b32.xlu2 %v890_v42, %s2015_s2 }
 0x861   :  { %1186 = vrot.lane.b32.xlu1 %v888_v45, %s2016_s17 }
 0x863   :  { %1182 = vrot.lane.b32.xlu2 %v891_v46, %s2015_s2 }
 0x869   :  { %1090 = vrot.lane.b32.xlu1 %v888_v45, %s2017_s7 }
 0x871   :  { %1084 = vrot.lane.b32.xlu1 %v890_v42, %s2018_s18 }
 0x872   :  { %v993_v50 = vpop.permute.xlu2 %992 }
 0x879   :  { %1707 = vrot.lane.b32.xlu1 %v2381_v47, %s2021_s14 }
 0x88c   :  { %v989_v17 = vpop.permute.xlu0 %988 }
 0x894   :  { %v895_v51 = vpop.permute.xlu0 %894 }
 0x89c   :  { %v1185_v54 = vpop.permute.xlu0 %1184 }
 0x8a4   :  { %v1089_v9 = vpop.permute.xlu0 %1088 }
 0x8ad   :  { %v991_v52 = vpop.permute.xlu2 %990 }
 0x8b5   :  { %v1181_v55 = vpop.permute.xlu2 %1180 }
 0x8bd   :  { %v1183_v57 = vpop.permute.xlu2 %1182 }
 0x8c3   :  { %v995_v49 = vpop.permute.xlu1 %994 }
 0x8c4   :  { %1618 = vmatpush.xpose.msk.msrb.mxu3 %vm199_vm1, %v995_v49 }
 0x8c5   :  { %v1087_v59 = vpop.permute.xlu0 %1086 }
 0x8c8   :  { %1619 = vmatpush.xpose.msk.msrb.mxu3 %vm199_vm1, %v993_v50 }
 0x8cb   :  { %v897_v48 = vpop.permute.xlu1 %896  ;;  %1620 = vmatmul.msk.f32.vlgmr.msrb.gmra.mxu3 %vm199_vm1, %v989_v17 }
 0x8cc   :  { %1612 = vmatpush.xpose.msk.msrb.mxu0 %vm199_vm1, %v897_v48 }
 0x8d0   :  { %1613 = vmatpush.xpose.msk.msrb.mxu0 %vm199_vm1, %v895_v51 }
 0x8d3   :  { %v1187_v6 = vpop.permute.xlu1 %1186  ;;  %1614 = vmatmul.msk.f32.vlgmr.msrb.gmra.mxu0 %vm199_vm1, %v890_v42  ;;  %1621 = vmatmul.msk.f32.gmra.mxu3 %vm199_vm1, %v991_v52 }
 0x8d4   :  { %1630 = vmatpush.xpose.msk.msra.mxu3 %vm199_vm1, %v1187_v6 }
 0x8d8   :  { %1631 = vmatpush.xpose.msk.msra.mxu3 %vm199_vm1, %v1185_v54 }
 0x8db   :  { %v1091_v56 = vpop.permute.xlu1 %1090  ;;  %1615 = vmatmul.msk.f32.gmra.mxu0 %vm199_vm1, %v891_v46  ;;  %1632 = vmatmul.msk.f32.vlgmr.msra.gmra.mxu3 %vm199_vm1, %v1181_v55 }
 0x8dc   :  { %1624 = vmatpush.xpose.msk.msra.mxu0 %vm199_vm1, %v1091_v56 }
 0x8e0   :  { %1625 = vmatpush.xpose.msk.msra.mxu0 %vm199_vm1, %v1089_v9 }
 0x8e3   :  { %v1085_v58 = vpop.permute.xlu1 %1084  ;;  %1633 = vmatmul.msk.f32.gmra.mxu3 %vm199_vm1, %v1183_v57 }
 0x8e4   :  { %1626 = vmatmul.msk.f32.vlgmr.msra.gmra.mxu0 %vm199_vm1, %v1085_v58 }
 0x8eb   :  { %v1708_v60 = vpop.permute.xlu1 %1707 }
 0x8ec   :  { %v1709_v61 = vunpack.i.l.bf16 %v1708_v60  ;;  %1627 = vmatmul.msk.f32.gmra.mxu0 %vm199_vm1, %v1087_v59  ;;  %v1710_v62 = vunpack.i.h.bf16 %v1708_v60 }
 0x8ee   :  { %1075 = vmatpush.msra.mxu2 %v1709_v61 }
 0x8f0   :  { %1076 = vmatpush.msra.mxu2 %v1710_v62 }
 0x94e   :  { %v1021_v63 = vpop.f32.mrf.mxu3 }
 0x94f   :  { %v1022_v0 = vadd.f32 %v1021_v63, %v2194_v32 }
 0x950   :  { %v925_v1 = vpop.f32.mrf.mxu0 }
 0x951   :  { %v926_v2 = vadd.f32 %v925_v1, %v2194_v32  ;;  %v1027_v3 = vsel %vm233_vm2, %v1022_v0, -inf }
 0x952   :  { %1028 = vmax.xlane.f32.xlu2 %v1027_v3 }
 0x953   :  { %v931_v4 = vsel %vm233_vm2, %v926_v2, -inf }
 0x954   :  { %932 = vmax.xlane.f32.xlu1 %v931_v4 }
 0x956   :  { %v1024_v5 = vpop.f32.mrf.mxu3 }
 0x957   :  { %v1025_v7 = vadd.f32 %v1024_v5, %v2202_v44 }
 0x958   :  { %v928_v8 = vpop.f32.mrf.mxu0 }
 0x959   :  { %v929_v10 = vadd.f32 %v928_v8, %v2202_v44  ;;  %v1030_v12 = vsel %vm233_vm2, %v1025_v7, -inf }
 0x95a   :  { %1031 = vmax.xlane.f32.xlu0 %v1030_v12 }
 0x95b   :  { %v934_v13 = vsel %vm233_vm2, %v929_v10, -inf }
 0x95c   :  { %935 = vmax.xlane.f32.xlu2 %v934_v13 }
 0x95e   :  { %v1213_v14 = vpop.f32.mrf.mxu3 }
 0x95f   :  { %v1214_v15 = vadd.f32 %v1213_v14, %v2194_v32 }
 0x961   :  { %v1117_v16 = vpop.f32.mrf.mxu0  ;;  %v1219_v18 = vsel %vm233_vm2, %v1214_v15, -inf }
 0x962   :  { %v1118_v11 = vadd.f32 %v1117_v16, %v2194_v32  ;;  %1220 = vmax.xlane.f32.xlu1 %v1219_v18 }
 0x964   :  { %v1123_v19 = vsel %vm233_vm2, %v1118_v11, -inf }
 0x965   :  { %1124 = vmax.xlane.f32.xlu0 %v1123_v19 }
 0x966   :  { %v1216_v20 = vpop.f32.mrf.mxu3 }
 0x967   :  { %v2422_v21 = vadd.f32 %v1216_v20, %v2202_v44 }
 0x969   :  { %v1120_v22 = vpop.f32.mrf.mxu0  ;;  %v1222_v23 = vsel %vm233_vm2, %v2422_v21, -inf }
 0x96a   :  { %v1121_v25 = vadd.f32 %v1120_v22, %v2202_v44  ;;  %1223 = vmax.xlane.f32.xlu2 %v1222_v23 }
 0x96c   :  { %v1126_v26 = vsel %vm233_vm2, %v1121_v25, -inf }
 0x96d   :  { %1127 = vmax.xlane.f32.xlu1 %v1126_v26 }
 0x986   :  { %1717 = vrot.lane.b32.xlu1 %v2381_v47, %s2020_s8 }
 0x9c5   :  { %v1029_v32 = vpop.xlane.xlu2 %1028 }
 0x9c6   :  { %v1033_v27 = vsub.f32 %v1022_v0, %v1029_v32 }
 0x9c7   :  { %v933_v28 = vpop.xlane.xlu1 %932 }
 0x9c8   :  { %v1035_v29 = vmul.f32 1.442695, %v1033_v27  ;;  %v937_v30 = vsub.f32 %v926_v2, %v933_v28 }
 0x9ca   :  { %1784 = vpow2.f32 %v1035_v29  ;;  %v939_v31 = vmul.f32 1.442695, %v937_v30 }
 0x9cc   :  { %1786 = vpow2.f32 %v939_v31 }
 0x9cd   :  { %v1032_v33 = vpop.xlane.xlu0 %1031 }
 0x9ce   :  { %v1034_v39 = vsub.f32 %v1025_v7, %v1032_v33 }
 0x9cf   :  { %v936_v34 = vpop.xlane.xlu2 %935 }
 0x9d0   :  { %v1785_v35 = vpop.eup %1784  ;;  %v938_v36 = vsub.f32 %v929_v10, %v936_v34  ;;  %v1037_v42 = vmul.f32 1.442695, %v1034_v39 }
 0x9d1   :  { %v1039_v44 = vsel %vm233_vm2, %v1785_v35, 0.0 }
 0x9d2   :  { %v2431_v37 = vpop.eup %1786  ;;  %v941_v40 = vmul.f32 1.442695, %v938_v36  ;;  %1040 = vadd.xlane.f32.xlu0 %v1039_v44 }
 0x9d3   :  { %v943_v41 = vsel %vm233_vm2, %v2431_v37, 0.0 }
 0x9d4   :  { %1788 = vpow2.f32 %v941_v40  ;;  %944 = vadd.xlane.f32.xlu2 %v943_v41 }
 0x9d5   :  { %v1221_v43 = vpop.xlane.xlu1 %1220  ;;  %1790 = vpow2.f32 %v1037_v42 }
 0x9d6   :  { %v1225_v6 = vsub.f32 %v1214_v15, %v1221_v43 }
 0x9d8   :  { %v1125_v45 = vpop.xlane.xlu0 %1124  ;;  %v1227_v56 = vmul.f32 1.442695, %v1225_v6 }
 0x9d9   :  { %v1129_v17 = vsub.f32 %v1118_v11, %v1125_v45 }
 0x9da   :  { %v1789_v46 = vpop.eup %1788 }
 0x9db   :  { %v946_v49 = vsel %vm233_vm2, %v1789_v46, 0.0  ;;  %v1131_v50 = vmul.f32 1.442695, %v1129_v17  ;;  %v1791_v51 = vpop.eup %1790 }
 0x9dc   :  { %947 = vadd.xlane.f32.xlu0 %v946_v49  ;;  %v1042_v55 = vsel %vm233_vm2, %v1791_v51, 0.0  ;;  %v1639_v49 = vld [vmem:[%s2572_s5 + $0x38] sm:$0xff] }
 0x9dd   :  { %1792 = vpow2.f32 %v1131_v50  ;;  %v1224_v1 = vpop.xlane.xlu2 %1223  ;;  %v1638_v50 = vld [vmem:[%s2572_s5 + $0x30] sm:$0xff]  ;;  %1334 = vmatpush.msrb.mxu0 %v1639_v49 }
 0x9de   :  { %v1226_v2 = vsub.f32 %v2422_v21, %v1224_v1 }
 0x9df   :  { %1335 = vmatpush.msrb.mxu0 %v1638_v50 }
 0x9e0   :  { %v1128_v48 = vpop.xlane.xlu1 %1127  ;;  %v1229_v3 = vmul.f32 1.442695, %v1226_v2 }
 0x9e1   :  { %v1130_v52 = vsub.f32 %v1121_v25, %v1128_v48  ;;  %v1636_v48 = vld [vmem:[%s2572_s5 + $0x20] sm:$0xff] }
 0x9e3   :  { %v1133_v54 = vmul.f32 1.442695, %v1130_v52  ;;  %v2437_v9 = vpop.eup %1792 }
 0x9e4   :  { %1043 = vadd.xlane.f32.xlu0 %v1042_v55  ;;  %v1135_v58 = vsel %vm233_vm2, %v2437_v9, 0.0 }
 0x9e5   :  { %1794 = vpow2.f32 %v1133_v54 }
 0x9e6   :  { %1796 = vpow2.f32 %v1227_v56 }
 0x9e7   :  { %1798 = vpow2.f32 %v1229_v3 }
 0x9eb   :  { %v2439_v57 = vpop.eup %1794 }
 0x9ec   :  { %1712 = vrot.lane.b32.xlu2 %v2381_v47, %s2019_s19  ;;  %1136 = vadd.xlane.f32.xlu0 %v1135_v58  ;;  %v1138_v59 = vsel %vm233_vm2, %v2439_v57, 0.0  ;;  %v1797_v60 = vpop.eup %1796 }
 0x9ed   :  { %1139 = vadd.xlane.f32.xlu1 %v1138_v59  ;;  %v1231_v61 = vsel %vm233_vm2, %v1797_v60, 0.0  ;;  %v1799_v4 = vpop.eup %1798 }
 0x9ee   :  { %v1234_v5 = vsel %vm233_vm2, %v1799_v4, 0.0 }
 0x9f4   :  { %1232 = vadd.xlane.f32.xlu0 %v1231_v61 }
 0x9f8   :  { %v1718_v62 = vpop.permute.xlu1 %1717 }
 0x9f9   :  { %v1719_v63 = vunpack.i.l.bf16 %v1718_v62  ;;  %v1720_v0 = vunpack.i.h.bf16 %v1718_v62 }
 0x9fb   :  { %1267 = vmatpush.msrb.mxu2 %v1719_v63  ;;  %v1735_v63 = vld [vmem:[%s2573_s6 + $0x1] ss:$0 sm:$0xff] }
 0x9fd   :  { %1268 = vmatpush.msrb.mxu2 %v1720_v0 }
 0xa08   :  { %1722 = vrot.lane.b32.xlu0 %v2381_v47, %s2022_s21 }
 0xa15   :  { %1235 = vadd.xlane.f32.xlu2 %v1234_v5 }
 0xa45   :  { %v1041_v7 = vpop.xlane.xlu0 %1040 }
 0xa46   :  { %1800 = vrcp.f32 %v1041_v7 }
 0xa47   :  { %v945_v8 = vpop.xlane.xlu2 %944 }
 0xa48   :  { %1802 = vrcp.f32 %v945_v8 }
 0xa4c   :  { %v1801_v10 = vpop.eup %1800 }
 0xa4d   :  { %v1047_v12 = vmul.f32 %v1801_v10, %v1785_v35 }
 0xa4e   :  { %v1803_v15 = vpop.eup %1802 }
 0xa4f   :  { %v1713_v13 = vpop.permute.xlu2 %1712  ;;  %1622 = vmatmul.msk.f32.vlgmr.msra.gmra.mxu2 %vm233_vm2, %v1047_v12  ;;  %v948_v14 = vpop.xlane.xlu0 %947  ;;  %v951_v47 = vmul.f32 %v1803_v15, %v2431_v37 }
 0xa50   :  { %v1714_v16 = vunpack.i.l.bf16 %v1713_v13  ;;  %v1715_v18 = vunpack.i.h.bf16 %v1713_v13  ;;  %1804 = vrcp.f32 %v948_v14 }
 0xa52   :  { %979 = vmatpush.msrb.mxu1 %v1714_v16 }
 0xa54   :  { %980 = vmatpush.msrb.mxu1 %v1715_v18 }
 0xa55   :  { %1616 = vmatmul.msk.f32.vlgmr.msrb.gmra.mxu1 %vm233_vm2, %v951_v47 }
 0xa56   :  { %v1805_v19 = vpop.eup %1804 }
 0xa57   :  { %v1044_v11 = vpop.xlane.xlu0 %1043  ;;  %v952_v20 = vmul.f32 %v1805_v19, %v1789_v46  ;;  %v1645_v19 = vld [vmem:[%s2576_s9 + $0x30] sm:$0xff] }
 0xa58   :  { %1806 = vrcp.f32 %v1044_v11 }
 0xa5d   :  { %1617 = vmatmul.msk.f32.gmra.mxu1 %vm233_vm2, %v952_v20  ;;  %v1644_v20 = vld [vmem:[%s2576_s9 + $0x28] sm:$0xff] }
 0xa5e   :  { %v1807_v21 = vpop.eup %1806 }
 0xa5f   :  { %v1137_v22 = vpop.xlane.xlu0 %1136  ;;  %v1048_v23 = vmul.f32 %v1807_v21, %v1791_v51  ;;  %v1637_v51 = vld [vmem:[%s2572_s5 + $0x28] sm:$0xff]  ;;  %v1643_v21 = vld [vmem:[%s2576_s9 + $0x20] sm:$0xff] }
 0xa60   :  { %v1140_v27 = vpop.xlane.xlu1 %1139  ;;  %1336 = vmatpush.msrb.mxu0 %v1637_v51 }
 0xa61   :  { %1623 = vmatmul.msk.f32.gmra.mxu2 %vm233_vm2, %v1048_v23 }
 0xa62   :  { %1337 = vmatpush.msrb.mxu0 %v1636_v48 }
 0xa67   :  { %v1233_v25 = vpop.xlane.xlu0 %1232 }
 0xa68   :  { %1808 = vrcp.f32 %v1233_v25 }
 0xa69   :  { %1810 = vrcp.f32 %v1137_v22 }
 0xa6a   :  { %1812 = vrcp.f32 %v1140_v27 }
 0xa6e   :  { %v1809_v26 = vpop.eup %1808 }
 0xa6f   :  { %v1239_v32 = vmul.f32 %v1809_v26, %v1797_v60  ;;  %v1811_v29 = vpop.eup %1810 }
 0xa70   :  { %v1143_v33 = vmul.f32 %v1811_v29, %v2437_v9  ;;  %v1813_v34 = vpop.eup %1812 }
 0xa71   :  { %1634 = vmatmul.msk.f32.vlgmr.msrb.gmra.mxu2 %vm233_vm2, %v1239_v32  ;;  %v1144_v35 = vmul.f32 %v1813_v34, %v2439_v57  ;;  %v1736_v34 = vld [vmem:[#allocation8 + $0x1] ss:$0 sm:$0xff] }
 0xa7a   :  { %v1723_v28 = vpop.permute.xlu0 %1722 }
 0xa7b   :  { %v1724_v30 = vunpack.i.l.bf16 %v1723_v28  ;;  %v1725_v31 = vunpack.i.h.bf16 %v1723_v28 }
 0xa7d   :  { %1171 = vmatpush.msra.mxu1 %v1724_v30 }
 0xa7f   :  { %1172 = vmatpush.msra.mxu1 %v1725_v31  ;;  %v1657_v31 = vld [vmem:[%s2578_s11 + $0x78] sm:$0xff] }
 0xa80   :  { %1628 = vmatmul.msk.f32.vlgmr.msra.gmra.mxu1 %vm233_vm2, %v1143_v33  ;;  %v1656_v33 = vld [vmem:[%s2578_s11 + $0x70] sm:$0xff]  ;;  %1474 = vmatpush.msrb.mxu3 %v1657_v31 }
 0xa82   :  { %1475 = vmatpush.msrb.mxu3 %v1656_v33 }
 0xa88   :  { %v1236_v36 = vpop.xlane.xlu2 %1235  ;;  %1629 = vmatmul.msk.f32.gmra.mxu1 %vm233_vm2, %v1144_v35 }
 0xa89   :  { %1814 = vrcp.f32 %v1236_v36  ;;  %v1655_v36 = vld [vmem:[%s2578_s11 + $0x68] sm:$0xff] }
 0xa8a   :  { %1476 = vmatpush.msrb.mxu3 %v1655_v36 }
 0xa8f   :  { %v1815_v44 = vpop.eup %1814 }
 0xa90   :  { %v1240_v37 = vmul.f32 %v1815_v44, %v1799_v4 }
 0xa92   :  { %1635 = vmatmul.msk.f32.gmra.mxu2 %vm233_vm2, %v1240_v37 }
 0xad2   :  { %v1078_v39 = vpop.f32.mrf.mxu2  ;;  %v982_v40 = vpop.f32.mrf.mxu1 }
 0xad3   :  { %1278 = vrot.lane.b32.xlu0 %v1078_v39, %s2004_s27  ;;  %v1737_v39 = vld [vmem:[#allocation10 + $0x1] ss:$0 sm:$0xff] }
 0xada   :  { %v985_v43 = vpop.f32.mrf.mxu1 }
 0xae4   :  { %v1081_v41 = vpop.f32.mrf.mxu2 }
 0xaf4   :  { %v1270_v42 = vpop.f32.mrf.mxu2 }
 0xaf5   :  { %1294 = vrot.lane.b32.xlu2 %v1270_v42, %s2586_s4 }
 0xafd   :  { %v1174_v45 = vpop.f32.mrf.mxu1 }
 0xafe   :  { %1286 = vrot.lane.b32.xlu0 %v1174_v45, %s2006_s30  ;;  %v1653_v45 = vld [vmem:[%s2578_s11 + $0x58] sm:$0xff] }
 0xb05   :  { %v1177_v46 = vpop.f32.mrf.mxu1 }
 0xb06   :  { %1280 = vrot.lane.b32.xlu0 %v1081_v41, %s2004_s27  ;;  %1288 = vrot.lane.b32.xlu1 %v1177_v46, %s2006_s30  ;;  %v1654_v41 = vld [vmem:[%s2578_s11 + $0x60] sm:$0xff] }
 0xb07   :  { %1477 = vmatpush.msrb.mxu3 %v1654_v41 }
 0xb09   :  { %1478 = vmatpush.msrb.mxu3 %v1653_v45 }
 0xb15   :  { %v1273_v17 = vpop.f32.mrf.mxu2 }
 0xb16   :  { %1296 = vrot.lane.b32.xlu0 %v1273_v17, %s2586_s4 }
 0xb45   :  { %v1279_v52 = vpop.permute.xlu0 %1278 }
 0xb46   :  { %v1300_v6 = vsel %vm199_vm1, %v982_v40, %v1279_v52 }
 0xb4f   :  { %v1295_v55 = vpop.permute.xlu2 %1294 }
 0xb70   :  { %v1287_v54 = vpop.permute.xlu0 %1286 }
 0xb71   :  { %v1302_v56 = vsel %vm233_vm2, %v1300_v6, %v1287_v54 }
 0xb72   :  { %v1304_v9 = vsel %vm607_vm3, %v1302_v56, %v1295_v55 }
 0xb73   :  { %1641 = vmatmul.msk.f32.vlgmr.msrb.gmra.mxu0 %vm161_vm0, %v1304_v9  ;;  %v1652_v9 = vld [vmem:[%s2578_s11 + $0x50] sm:$0xff] }
 0xb74   :  { %1479 = vmatpush.msrb.mxu3 %v1652_v9 }
 0xb78   :  { %v1281_v57 = vpop.permute.xlu0 %1280  ;;  %v1289_v59 = vpop.permute.xlu1 %1288 }
 0xb79   :  { %v1301_v58 = vsel %vm199_vm1, %v985_v43, %v1281_v57  ;;  %v1651_v57 = vld [vmem:[%s2578_s11 + $0x48] sm:$0xff] }
 0xb7a   :  { %v1303_v60 = vsel %vm233_vm2, %v1301_v58, %v1289_v59  ;;  %1480 = vmatpush.msrb.mxu3 %v1651_v57  ;;  %v1650_v58 = vld [vmem:[%s2578_s11 + $0x40] sm:$0xff] }
 0xb7b   :  { %v1738_v59 = vld [vmem:[%s2577_s10 + $0x1] ss:$0 sm:$0xff] }
 0xb7c   :  { %1481 = vmatpush.msrb.mxu3 %v1650_v58 }
 0xb88   :  { %v1297_v61 = vpop.permute.xlu0 %1296 }
 0xb89   :  { %v1305_v62 = vsel %vm607_vm3, %v1303_v60, %v1297_v61 }
 0xb8a   :  { %1642 = vmatmul.msk.f32.gmra.mxu0 %vm161_vm0, %v1305_v62 }
 0xbf0   :  { %v1339_v0 = vpop.f32.mrf.mxu0 }
 0xbf1   :  { %v1340_v1 = vadd.f32 %v1735_v63, %v1339_v0 }
 0xbf3   :  { %v1345_v2 = vadd.f32 %v1340_v1, %v2363_v24 }
 0xbf5   :  { %v1351_v3 = vsel %vm161_vm0, %v1345_v2, 0.0 }
 0xbf6   :  { %1352 = vadd.xlane.f32.xlu0 %v1351_v3 }
 0xc07   :  { %v1342_v4 = vpop.f32.mrf.mxu0 }
 0xc08   :  { %v1343_v5 = vadd.f32 %v1735_v63, %v1342_v4 }
 0xc0a   :  { %v1346_v7 = vadd.f32 %v1343_v5, %v2368_v38  ;;  %v1646_v38 = vld [vmem:[%s2576_s9 + $0x38] sm:$0xff] }
 0xc0b   :  { %1433 = vmatpush.msrb.mxu1 %v1646_v38 }
 0xc0c   :  { %v1354_v8 = vsel %vm161_vm0, %v1346_v7, 0.0 }
 0xc0d   :  { %1355 = vadd.xlane.f32.xlu2 %v1354_v8  ;;  %1434 = vmatpush.msrb.mxu1 %v1645_v19 }
 0xc0f   :  { %1435 = vmatpush.msrb.mxu1 %v1644_v20 }
 0xc11   :  { %1436 = vmatpush.msrb.mxu1 %v1643_v21 }
 0xc69   :  { %v1353_v10 = vpop.xlane.xlu0 %1352 }
 0xc6a   :  { %v1357_v12 = vmul.f32 %v1353_v10, %v2287_v53 }
 0xc6c   :  { %v1359_v13 = vsub.f32 %v1345_v2, %v1357_v12  ;;  %v1739_v2 = vld [vmem:[%s2579_s12 + $0x1] ss:$0 sm:$0xff]  ;;  %s2025_s12 = smov [#allocation13]  }
 0xc6e   :  { %v1361_v14 = vmul.f32 %v1359_v13, %v1359_v13 }
 0xc70   :  { %v1363_v15 = vsel %vm161_vm0, %v1361_v14, 0.0 }
 0xc71   :  { %1364 = vadd.xlane.f32.xlu1 %v1363_v15 }
 0xc80   :  { %v1356_v16 = vpop.xlane.xlu2 %1355 }
 0xc81   :  { %v1358_v24 = vmul.f32 %v1356_v16, %v2287_v53 }
 0xc83   :  { %v1360_v18 = vsub.f32 %v1346_v7, %v1358_v24 }
 0xc85   :  { %v1362_v47 = vmul.f32 %v1360_v18, %v1360_v18 }
 0xc87   :  { %v1366_v11 = vsel %vm161_vm0, %v1362_v47, 0.0 }
 0xc88   :  { %1367 = vadd.xlane.f32.xlu0 %v1366_v11 }
 0xce4   :  { %v1365_v22 = vpop.xlane.xlu1 %1364 }
 0xce5   :  { %v1369_v23 = vmul.f32 %v1365_v22, %v2287_v53 }
 0xce7   :  { %v1371_v25 = vadd.f32 1e-05, %v1369_v23 }
 0xce9   :  { %1816 = vrsqrt.f32 %v1371_v25  ;;  %vm1379_vm2 = vweird.f32 %v1371_v25 }
 0xcef   :  { %v1817_v26 = vpop.eup %1816 }
 0xcf0   :  { %v1374_v32 = vmul.f32 %v1817_v26, %v1371_v25  ;;  %vm1380_vm1 = vweird.f32 %v1817_v26 }
 0xcf1   :  { %vm1381_vm3 = vmor %vm1379_vm2, %vm1380_vm1 }
 0xcf2   :  { %v1375_v27 = vmul.f32 %v1817_v26, %v1374_v32 }
 0xcf4   :  { %v1376_v28 = vmul.f32 0.5, %v1375_v27 }
 0xcf6   :  { %v1377_v29 = vsub.f32 1.5, %v1376_v28 }
 0xcf8   :  { %v1378_v30 = vmul.f32 %v1817_v26, %v1377_v29 }
 0xcfa   :  { %v1382_v35 = vsel %vm1381_vm3, %v1817_v26, %v1378_v30  ;;  %v1740_v30 = vld [vmem:[%s2580_s13 + $0x1] ss:$0 sm:$0xff]  ;;  %s1555_s13 = sshll.u32 %s2025_s12, 4  ;;  %s1556_s13 = int_to_ptr.vmem [resolvable:$true] %s1555_s13 }
 0xcfb   :  { %v1393_v44 = vmul.f32 %v1382_v35, %v1359_v13  ;;  %v1368_v37 = vpop.xlane.xlu0 %1367  ;;  %v1741_v35 = vld [vmem:[#allocation11 + $0x1] ss:$0 sm:$0xff] }
 0xcfc   :  { %v1370_v40 = vmul.f32 %v1368_v37, %v2287_v53 }
 0xcfd   :  { %v1398_v42 = vmul.f32 %v1736_v34, %v1393_v44 }
 0xcfe   :  { %v1372_v43 = vadd.f32 1e-05, %v1370_v40 }
 0xcff   :  { %v1403_v46 = vadd.f32 %v1737_v39, %v1398_v42 }
 0xd00   :  { %1818 = vrsqrt.f32 %v1372_v43  ;;  %vm1389_vm7 = vweird.f32 %v1372_v43 }
 0xd01   :  { %1648 = vmatmul.msk.f32.vlgmr.msrb.gmra.mxu1 %vm161_vm0, %v1403_v46 }
 0xd06   :  { %v1819_v17 = vpop.eup %1818 }
 0xd07   :  { %v1384_v49 = vmul.f32 %v1819_v17, %v1372_v43  ;;  %vm1390_vm6 = vweird.f32 %v1819_v17 }
 0xd08   :  { %vm1391_vm8 = vmor %vm1389_vm7, %vm1390_vm6 }
 0xd09   :  { %v1385_v50 = vmul.f32 %v1819_v17, %v1384_v49 }
 0xd0b   :  { %v1386_v51 = vmul.f32 0.5, %v1385_v50 }
 0xd0d   :  { %v1387_v48 = vsub.f32 1.5, %v1386_v51 }
 0xd0f   :  { %v1388_v52 = vmul.f32 %v1819_v17, %v1387_v48 }
 0xd11   :  { %v1392_v6 = vsel %vm1391_vm8, %v1819_v17, %v1388_v52 }
 0xd12   :  { %v1394_v54 = vmul.f32 %v1392_v6, %v1360_v18 }
 0xd14   :  { %v1399_v55 = vmul.f32 %v1736_v34, %v1394_v54 }
 0xd16   :  { %v1404_v56 = vadd.f32 %v1737_v39, %v1399_v55 }
 0xd18   :  { %1649 = vmatmul.msk.f32.gmra.mxu1 %vm161_vm0, %v1404_v56 }
 0xd7e   :  { %v1438_v60 = vpop.f32.mrf.mxu1 }
 0xd7f   :  { %v1439_v61 = vadd.f32 %v1738_v59, %v1438_v60 }
 0xd81   :  { %v1444_v62 = vmax.f32 %v1439_v61, 0.0 }
 0xd83   :  { %1659 = vmatmul.msk.f32.vlgmr.msrb.gmra.mxu3 %vm763_vm11, %v1444_v62 }
 0xd95   :  { %v1441_v63 = vpop.f32.mrf.mxu1 }
 0xd96   :  { %v1442_v0 = vadd.f32 %v1738_v59, %v1441_v63 }
 0xd98   :  { %v1445_v1 = vmax.f32 %v1442_v0, 0.0 }
 0xd9a   :  { %1660 = vmatmul.msk.f32.gmra.mxu3 %vm763_vm11, %v1445_v1 }
 0xe06   :  { %v1483_v3 = vpop.f32.mrf.mxu3 }
 0xe07   :  { %v1484_v4 = vadd.f32 %v1739_v2, %v1483_v3 }
 0xe09   :  { %v1489_v5 = vadd.f32 %v1484_v4, %v1403_v46 }
 0xe0b   :  { %v1495_v7 = vsel %vm161_vm0, %v1489_v5, 0.0 }
 0xe0c   :  { %1496 = vadd.xlane.f32.xlu2 %v1495_v7 }
 0xe1d   :  { %v1486_v8 = vpop.f32.mrf.mxu3 }
 0xe1e   :  { %v1487_v10 = vadd.f32 %v1739_v2, %v1486_v8 }
 0xe20   :  { %v1490_v12 = vadd.f32 %v1487_v10, %v1404_v56 }
 0xe22   :  { %v1498_v13 = vsel %vm161_vm0, %v1490_v12, 0.0 }
 0xe23   :  { %1499 = vadd.xlane.f32.xlu0 %v1498_v13 }
 0xe7f   :  { %v1497_v14 = vpop.xlane.xlu2 %1496 }
 0xe80   :  { %v1501_v15 = vmul.f32 %v1497_v14, %v2287_v53 }
 0xe82   :  { %v1503_v16 = vsub.f32 %v1489_v5, %v1501_v15 }
 0xe84   :  { %v1505_v24 = vmul.f32 %v1503_v16, %v1503_v16 }
 0xe86   :  { %v1507_v18 = vsel %vm161_vm0, %v1505_v24, 0.0 }
 0xe87   :  { %1508 = vadd.xlane.f32.xlu2 %v1507_v18 }
 0xe96   :  { %v1500_v47 = vpop.xlane.xlu0 %1499 }
 0xe97   :  { %v1502_v11 = vmul.f32 %v1500_v47, %v2287_v53 }
 0xe99   :  { %v1504_v38 = vsub.f32 %v1490_v12, %v1502_v11 }
 0xe9b   :  { %v1506_v19 = vmul.f32 %v1504_v38, %v1504_v38 }
 0xe9d   :  { %v1510_v20 = vsel %vm161_vm0, %v1506_v19, 0.0 }
 0xe9e   :  { %1511 = vadd.xlane.f32.xlu1 %v1510_v20 }
 0xefa   :  { %v1509_v21 = vpop.xlane.xlu2 %1508 }
 0xefb   :  { %v1513_v22 = vmul.f32 %v1509_v21, %v2287_v53 }
 0xefd   :  { %v1515_v23 = vadd.f32 1e-05, %v1513_v22 }
 0xeff   :  { %1820 = vrsqrt.f32 %v1515_v23  ;;  %vm1523_vm10 = vweird.f32 %v1515_v23 }
 0xf05   :  { %v1821_v25 = vpop.eup %1820 }
 0xf06   :  { %v1518_v26 = vmul.f32 %v1821_v25, %v1515_v23  ;;  %vm1524_vm9 = vweird.f32 %v1821_v25 }
 0xf07   :  { %vm1525_vm11 = vmor %vm1523_vm10, %vm1524_vm9 }
 0xf08   :  { %v1519_v32 = vmul.f32 %v1821_v25, %v1518_v26 }
 0xf0a   :  { %v1520_v27 = vmul.f32 0.5, %v1519_v32 }
 0xf0c   :  { %v1521_v28 = vsub.f32 1.5, %v1520_v27 }
 0xf0e   :  { %v1522_v29 = vmul.f32 %v1821_v25, %v1521_v28 }
 0xf10   :  { %v1526_v31 = vsel %vm1525_vm11, %v1821_v25, %v1522_v29 }
 0xf11   :  { %v1537_v33 = vmul.f32 %v1526_v31, %v1503_v16  ;;  %v1512_v34 = vpop.xlane.xlu1 %1511 }
 0xf12   :  { %v1514_v36 = vmul.f32 %v1512_v34, %v2287_v53 }
 0xf13   :  { %v1542_v44 = vmul.f32 %v1740_v30, %v1537_v33 }
 0xf14   :  { %v1516_v37 = vadd.f32 1e-05, %v1514_v36 }
 0xf15   :  { %v1547_v39 = vadd.f32 %v1741_v35, %v1542_v44 }
 0xf16   :  { %1822 = vrsqrt.f32 %v1516_v37  ;;  %vm1533_vm13 = vweird.f32 %v1516_v37 }
 0xf17   :  { %1549 = vst.msk [vmem:[#allocation13] sm:$0xff] %vm161_vm0, %v1547_v39 }
 0xf1c   :  { %v1823_v40 = vpop.eup %1822 }
 0xf1d   :  { %v1528_v41 = vmul.f32 %v1823_v40, %v1516_v37  ;;  %vm1534_vm12 = vweird.f32 %v1823_v40 }
 0xf1e   :  { %vm1535_vm14 = vmor %vm1533_vm13, %vm1534_vm12 }
 0xf1f   :  { %v1529_v42 = vmul.f32 %v1823_v40, %v1528_v41 }
 0xf21   :  { %v1530_v43 = vmul.f32 0.5, %v1529_v42 }
 0xf23   :  { %v1531_v45 = vsub.f32 1.5, %v1530_v43 }
 0xf25   :  { %v1532_v46 = vmul.f32 %v1823_v40, %v1531_v45 }
 0xf27   :  { %v1536_v17 = vsel %vm1535_vm14, %v1823_v40, %v1532_v46 }
 0xf28   :  { %v1538_v49 = vmul.f32 %v1536_v17, %v1504_v38 }
 0xf2a   :  { %v1543_v53 = vmul.f32 %v1740_v30, %v1538_v49 }
 0xf2c   :  { %v1548_v50 = vadd.f32 %v1741_v35, %v1543_v53 }
 0xf2e   :  { %1550 = vst.msk [vmem:[#allocation13 + $0x8] sm:$0xff] %vm161_vm0, %v1548_v50 }
 0xf2f   :  { %1563 = dma.vmem_to_hbm [thread:$0]  %s1556_s13, 256, %s1558_s1, [#allocation4], %s2587_s20, %s2587_s20, %s2004_s27  }
 0xf30   :  { %2000 = dma.done.wait [#allocation4], 256  }
 0xf31   :  { %2001 = vsyncadd [#allocation4], 4294967040 }
 0xf32   :  { %1568 = vsyncpa [#allocation3], 1 }
 0xf33   :  { %1569 = vsyncpa [#allocation6], 1 }
 0xf34   :  { %1570 = vsyncpa [#allocation9], 1 }
 0xf35   :  { %1571 = vsyncpa [#allocation12], 1 }
 0xf36   :  { %1572 = vsyncpa [#allocation4], 1 }

</bundles_post_ra>
